<compile_context>
chip_gen: v7x
topology: tpu7x:2x2x1
jax: 0.10.0
libtpu: 0.0.40
codegen_flags: <defaults>
</compile_context>

<pallas_src>
import functools
import math

import jax
import jax.numpy as jnp
from jax.experimental import pallas as pl
from jax.experimental.pallas import tpu as pltpu


# ----------------------------- exact GELU (erf) ------------------------------
_ERF_P = 0.3275911
_ERF_A = (0.254829592, -0.284496736, 1.421413741, -1.453152027, 1.061405429)


def _erf(x):
    # Abramowitz & Stegun 7.1.26 polynomial, |err| < 1.5e-7.
    # The 1/(1+p*a) divide goes to the EUP via pl.reciprocal (approx is far below the
    # bf16 noise floor of the following down-projection).
    s = jnp.where(x >= 0.0, 1.0, -1.0)
    a = jnp.abs(x)
    t = pl.reciprocal(1.0 + _ERF_P * a, approx=True)
    poly = t * (_ERF_A[0] + t * (_ERF_A[1] + t * (_ERF_A[2] + t * (_ERF_A[3] + t * _ERF_A[4]))))
    return s * (1.0 - poly * jnp.exp(-a * a))
    # TODO(synk): on v6e/v7x the polynomial could be evaluated in bf16 (packed vregs,
    # 2x VPU throughput); kept f32 here for v5e compatibility and reference accuracy.


def _gelu_exact(x):
    # Matches torch.nn.GELU() / HF "gelu" (exact, erf-based).
    return x * 0.5 * (1.0 + _erf(x * (1.0 / math.sqrt(2.0))))


def _layernorm(x, w, b, eps):
    # x: (M, H) f32, w/b: (1, H) f32.  PyTorch LayerNorm (biased variance).
    mu = jnp.mean(x, axis=-1, keepdims=True)
    xc = x - mu
    var = jnp.mean(xc * xc, axis=-1, keepdims=True)
    inv = jax.lax.rsqrt(var + eps)
    return xc * inv * w + b


# ----------------------------- Pallas kernel ----------------------------------
def _vit_encoder_kernel(hs_ref, ln1w_ref, ln1b_ref, wqkv_ref, bqkv_ref,
                        wo_ref, bo_ref, ln2w_ref, ln2b_ref,
                        wi_ref, bi_ref, wd_ref, bd_ref,
                        out_ref, ctx_ref, *, num_heads, eps, s_valid):
    # hs_ref/out_ref: (Bblk, S, H) f32 — out_ref is the VMEM-resident residual stream
    #                 (same block index for every layer step => carry across layers).
    # ctx_ref:        (Bblk*S, H) f32 VMEM scratch — per-head attention contexts are
    #                 written into their lane offsets (no concat, no long live ranges).
    # weight refs:    (1, ...) blocks of per-layer stacked params; matmul weights bf16,
    #                 LN params / biases f32.
    layer = pl.program_id(1)

    @pl.when(layer == 0)
    def _():
        out_ref[...] = hs_ref[...]            # seed residual stream with the input

    bblk, seq, hid = out_ref.shape
    dh = hid // num_heads
    scale = 1.0 / math.sqrt(dh)
    m_rows = bblk * seq

    x = out_ref[...].reshape(m_rows, hid)      # (Bblk*S, H) f32 residual

    # ---------------- attention block (layernorm_before -> MHSA -> residual) ----
    xn = _layernorm(x, ln1w_ref[0], ln1b_ref[0], eps)
    qkv = jnp.dot(xn.astype(jnp.bfloat16), wqkv_ref[0],
                  preferred_element_type=jnp.float32) + bqkv_ref[0]     # (Bblk*S, 3H)

    for b in range(bblk):                      # static unroll, Bblk is small
        r0 = b * seq
        for h in range(num_heads):             # static unroll, num_heads is small
            c0 = h * dh
            q = qkv[r0:r0 + seq, c0:c0 + dh].astype(jnp.bfloat16)
            k = qkv[r0:r0 + seq, hid + c0:hid + c0 + dh].astype(jnp.bfloat16)
            v = qkv[r0:r0 + seq, 2 * hid + c0:2 * hid + c0 + dh].astype(jnp.bfloat16)
            s = jax.lax.dot_general(q, k, (((1,), (1,)), ((), ())),
                                    preferred_element_type=jnp.float32) * scale
            if s_valid < seq:                  # static: only when S was padded
                kidx = jax.lax.broadcasted_iota(jnp.int32, (1, seq), 1)
                s = jnp.where(kidx >= s_valid, -1e30, s)
            s = s - jnp.max(s, axis=-1, keepdims=True)
            p = jnp.exp(s)
            p = p / jnp.sum(p, axis=-1, keepdims=True)   # exact softmax
            # Dropout(attention_probs) is identity at inference.
            # TODO(synk): head_mask scaling of attention_probs not implemented (None path).
            ctx_ref[r0:r0 + seq, c0:c0 + dh] = jnp.dot(
                p.astype(jnp.bfloat16), v, preferred_element_type=jnp.float32)

    attn_out = jnp.dot(ctx_ref[...].astype(jnp.bfloat16), wo_ref[0],
                       preferred_element_type=jnp.float32) + bo_ref[0]
    x = x + attn_out                                                     # residual 1

    # ---------------- MLP block (layernorm_after -> GELU MLP -> residual) -------
    xn2 = _layernorm(x, ln2w_ref[0], ln2b_ref[0], eps)
    inter = jnp.dot(xn2.astype(jnp.bfloat16), wi_ref[0],
                    preferred_element_type=jnp.float32) + bi_ref[0]
    inter = _gelu_exact(inter)
    mlp_out = jnp.dot(inter.astype(jnp.bfloat16), wd_ref[0],
                      preferred_element_type=jnp.float32) + bd_ref[0]
    out_ref[...] = (x + mlp_out).reshape(bblk, seq, hid)                 # residual 2
    # TODO(synk): for ViT-Large on v7x (64 MiB VMEM) the MLP weights should additionally
    # be tiled along the intermediate dim (inner pipeline axis); not needed at these sizes.


# ----------------------------- wrapper (glue) ----------------------------------
def _pick_batch_block(batch):
    # Largest divisor of `batch` that still leaves >= 2 parallel grid blocks
    # (megacore / v7x dual-TC), capped at 4 (weight-DMA amortization plateau).
    cap = min(4, max(1, batch // 2))
    for cand in range(cap, 0, -1):
        if batch % cand == 0:
            return cand
    return 1


def _vmem_capacity_bytes():
    try:
        return int(pltpu.get_tpu_info().vmem_capacity_bytes)
    except Exception:
        return 64 * 1024 * 1024   # conservative (v7x per-TC physical)


def vit_encoder_forward(hidden_states, params, num_heads, layer_norm_eps=1e-12,
                        batch_block=None):
    """ViTEncoder.forward default path: returns last_hidden_state.

    hidden_states: (B, S, H) f32.  params: per-layer stacked weights (see init_params).
    """
    hidden_states = hidden_states.astype(jnp.float32)
    B, S, H = hidden_states.shape
    L = params["w_qkv"].shape[0]
    I = params["w_i"].shape[-1]
    assert H % num_heads == 0

    Bblk = batch_block if batch_block is not None else _pick_batch_block(B)
    assert B % Bblk == 0, (B, Bblk)

    # Pad S to a multiple of 8 (sublane-aligned, unmasked whole-block stores); padded
    # key positions are masked inside the kernel, padded rows sliced off below.
    S_pad = -(-S // 8) * 8
    x_in = hidden_states
    if S_pad != S:
        x_in = jnp.pad(x_in, ((0, 0), (0, S_pad - S), (0, 0)))

    kernel = functools.partial(_vit_encoder_kernel, num_heads=num_heads,
                               eps=layer_norm_eps, s_valid=S)

    hid_spec = pl.BlockSpec((Bblk, S_pad, H), lambda b, l: (b, 0, 0))

    def par_spec(d1, d2):
        return pl.BlockSpec((1, d1, d2), lambda b, l: (l, 0, 0))

    # --- VMEM budget: derived from actual block sizes, clamped to device capacity. ---
    layer_param_bytes = sum(int(v.size) * v.dtype.itemsize for v in params.values()) // L
    hidden_block_bytes = Bblk * S_pad * H * 4
    temp_bytes = (Bblk * S_pad * (4 * H + 2 * I) * 4   # qkv, xn, inter(+gelu)
                  + S_pad * S_pad * 4                  # one head's scores
                  + hidden_block_bytes)                # ctx scratch
    needed = 2 * layer_param_bytes + 3 * hidden_block_bytes + temp_bytes
    vmem_limit = int(min(max(2 * needed, 32 * 1024 * 1024),
                         int(0.85 * _vmem_capacity_bytes())))

    # --- Advisory cost hints for the XLA scheduler (weights read B/Bblk times). ---
    flops_per_layer = (2 * S_pad * H * (3 * H)      # qkv projection
                       + 4 * S_pad * S_pad * H      # scores + probs @ v (all heads)
                       + 2 * S_pad * H * H          # output projection
                       + 4 * S_pad * H * I)         # MLP up + down
    cost = pl.CostEstimate(
        flops=int(B * L * flops_per_layer),
        transcendentals=int(B * L * (num_heads * S_pad * S_pad + S_pad * I)),
        bytes_accessed=int(2 * B * S_pad * H * 4
                           + (B // Bblk) * L * layer_param_bytes),
    )

    out = pl.pallas_call(
        kernel,
        out_shape=jax.ShapeDtypeStruct((B, S_pad, H), jnp.float32),
        grid=(B // Bblk, L),
        in_specs=[
            hid_spec,                                  # hidden_states
            par_spec(1, H), par_spec(1, H),            # layernorm_before weight / bias
            par_spec(H, 3 * H), par_spec(1, 3 * H),    # packed Wq|Wk|Wv, bias
            par_spec(H, H), par_spec(1, H),            # attention output dense
            par_spec(1, H), par_spec(1, H),            # layernorm_after weight / bias
            par_spec(H, I), par_spec(1, I),            # intermediate dense
            par_spec(I, H), par_spec(1, H),            # output dense
        ],
        out_specs=hid_spec,                            # same block across layers -> carry
        scratch_shapes=[pltpu.VMEM((Bblk * S_pad, H), jnp.float32)],
        compiler_params=pltpu.CompilerParams(
            dimension_semantics=("parallel", "arbitrary"),
            vmem_limit_bytes=vmem_limit),
        cost_estimate=cost,
    )(x_in,
      params["ln1_w"], params["ln1_b"],
      params["w_qkv"], params["b_qkv"],
      params["w_o"], params["b_o"],
      params["ln2_w"], params["ln2_b"],
      params["w_i"], params["b_i"],
      params["w_d"], params["b_d"])

    if S_pad != S:
        out = out[:, :S, :]
    return out
    # TODO(synk): output_attentions / output_hidden_states tuple collection and the
    # fine_grained_states prompt-concat path are not implemented (default forward only).


# ----------------------------- params -----------------------------------------
def init_params(key, num_layers, hidden, intermediate):
    ks = jax.random.split(key, 12)

    def n(k, shape, s=0.1):
        return s * jax.random.normal(k, shape, jnp.float32)

    L, H, I = num_layers, hidden, intermediate
    return dict(
        ln1_w=1.0 + n(ks[0], (L, 1, H), 0.05),
        ln1_b=n(ks[1], (L, 1, H), 0.05),
        w_qkv=n(ks[2], (L, H, 3 * H)).astype(jnp.bfloat16),   # [Wq | Wk | Wv]
        b_qkv=n(ks[3], (L, 1, 3 * H), 0.05),
        w_o=n(ks[4], (L, H, H)).astype(jnp.bfloat16),
        b_o=n(ks[5], (L, 1, H), 0.05),
        ln2_w=1.0 + n(ks[6], (L, 1, H), 0.05),
        ln2_b=n(ks[7], (L, 1, H), 0.05),
        w_i=n(ks[8], (L, H, I)).astype(jnp.bfloat16),
        b_i=n(ks[9], (L, 1, I), 0.05),
        w_d=n(ks[10], (L, I, H)).astype(jnp.bfloat16),
        b_d=n(ks[11], (L, 1, H), 0.05),
    )


# ----------------------------- pure-JAX reference ------------------------------
def ref_encoder(hidden_states, params, num_heads, eps=1e-12):
    hp = jax.lax.Precision.HIGHEST

    def ln(x, w, b):
        mu = x.mean(-1, keepdims=True)
        var = ((x - mu) ** 2).mean(-1, keepdims=True)
        return (x - mu) / jnp.sqrt(var + eps) * w + b

    x = hidden_states.astype(jnp.float32)
    B, S, H = x.shape
    L = params["w_qkv"].shape[0]
    dh = H // num_heads

    for l in range(L):
        wqkv = params["w_qkv"][l].astype(jnp.float32)
        wo = params["w_o"][l].astype(jnp.float32)
        wi = params["w_i"][l].astype(jnp.float32)
        wd = params["w_d"][l].astype(jnp.float32)

        xn = ln(x, params["ln1_w"][l, 0], params["ln1_b"][l, 0])
        qkv = jnp.einsum("bsh,hk->bsk", xn, wqkv, precision=hp) + params["b_qkv"][l, 0]
        q, k, v = jnp.split(qkv, 3, axis=-1)

        def heads(t):
            return t.reshape(B, S, num_heads, dh).transpose(0, 2, 1, 3)

        qh, kh, vh = heads(q), heads(k), heads(v)
        scores = jnp.einsum("bhqd,bhkd->bhqk", qh, kh, precision=hp) / math.sqrt(dh)
        probs = jax.nn.softmax(scores, axis=-1)
        ctx = jnp.einsum("bhqk,bhkd->bhqd", probs, vh, precision=hp)
        ctx = ctx.transpose(0, 2, 1, 3).reshape(B, S, H)
        attn_out = jnp.einsum("bsh,hk->bsk", ctx, wo, precision=hp) + params["b_o"][l, 0]
        x = x + attn_out

        xn2 = ln(x, params["ln2_w"][l, 0], params["ln2_b"][l, 0])
        inter = jax.nn.gelu(
            jnp.einsum("bsh,hi->bsi", xn2, wi, precision=hp) + params["b_i"][l, 0],
            approximate=False)
        mlp_out = jnp.einsum("bsi,ih->bsh", inter, wd, precision=hp) + params["b_d"][l, 0]
        x = x + mlp_out
    return x


# ----------------------------- main --------------------------------------------
if __name__ == "__main__":
    # Correctness-only toy shapes (do NOT use these for performance tuning — lanes are
    # <= 25% occupied; tune on real ViT shapes S=197/577, H=768/1024).
    batch, seq, hidden = 2, 8, 32
    num_heads, num_layers = 4, 2
    intermediate = 4 * hidden

    key = jax.random.PRNGKey(0)
    kparam, kx = jax.random.split(key)
    params = init_params(kparam, num_layers, hidden, intermediate)
    hidden_states = jax.random.normal(kx, (batch, seq, hidden), jnp.float32)

    out = vit_encoder_forward(hidden_states, params, num_heads)
    out = jax.block_until_ready(out)

    ref = jax.block_until_ready(ref_encoder(hidden_states, params, num_heads))
    assert out.shape == (batch, seq, hidden), out.shape
    # Kernel uses bf16 MXU operands with f32 accumulation; reference is full-f32
    # HIGHEST, so allow the small bf16 rounding delta.
    max_err = float(jnp.max(jnp.abs(out - ref)))
    assert jnp.allclose(out, ref, atol=2e-2, rtol=2e-2), max_err
    print("KERNEL_OK")
</pallas_src>

<mosaic_0001>
module attributes {stable_mosaic.version = 11 : i64} {
  func.func @_vit_encoder_kernel(%arg0: i32, %arg1: i32, %arg2: memref<1x8x32xf32, #tpu.memory_space<vmem>>, %arg3: memref<1x1x32xf32, #tpu.memory_space<vmem>>, %arg4: memref<1x1x32xf32, #tpu.memory_space<vmem>>, %arg5: memref<1x32x96xbf16, #tpu.memory_space<vmem>>, %arg6: memref<1x1x96xf32, #tpu.memory_space<vmem>>, %arg7: memref<1x32x32xbf16, #tpu.memory_space<vmem>>, %arg8: memref<1x1x32xf32, #tpu.memory_space<vmem>>, %arg9: memref<1x1x32xf32, #tpu.memory_space<vmem>>, %arg10: memref<1x1x32xf32, #tpu.memory_space<vmem>>, %arg11: memref<1x32x128xbf16, #tpu.memory_space<vmem>>, %arg12: memref<1x1x128xf32, #tpu.memory_space<vmem>>, %arg13: memref<1x128x32xbf16, #tpu.memory_space<vmem>>, %arg14: memref<1x1x32xf32, #tpu.memory_space<vmem>>, %arg15: memref<1x8x32xf32, #tpu.memory_space<vmem>>, %arg16: memref<8x32xf32, #tpu.memory_space<vmem>>) attributes {dimension_semantics = [#tpu.dimension_semantics<parallel>, #tpu.dimension_semantics<arbitrary>], iteration_bounds = array<i64: 2, 2>, scalar_prefetch = 0 : i64, scratch_operands = 1 : i64, tpu.core_type = #tpu.core_type<tc>, window_params = [{transform_indices = @transform_0, window_bounds = array<i64: 1, 8, 32>}, {transform_indices = @transform_1, window_bounds = array<i64: 1, 1, 32>}, {transform_indices = @transform_2, window_bounds = array<i64: 1, 1, 32>}, {transform_indices = @transform_3, window_bounds = array<i64: 1, 32, 96>}, {transform_indices = @transform_4, window_bounds = array<i64: 1, 1, 96>}, {transform_indices = @transform_5, window_bounds = array<i64: 1, 32, 32>}, {transform_indices = @transform_6, window_bounds = array<i64: 1, 1, 32>}, {transform_indices = @transform_7, window_bounds = array<i64: 1, 1, 32>}, {transform_indices = @transform_8, window_bounds = array<i64: 1, 1, 32>}, {transform_indices = @transform_9, window_bounds = array<i64: 1, 32, 128>}, {transform_indices = @transform_10, window_bounds = array<i64: 1, 1, 128>}, {transform_indices = @transform_11, window_bounds = array<i64: 1, 128, 32>}, {transform_indices = @transform_12, window_bounds = array<i64: 1, 1, 32>}, {transform_indices = @transform_13, window_bounds = array<i64: 1, 8, 32>}]} {
    %c0_i32 = arith.constant 0 : i32
    %0 = arith.cmpi eq, %arg1, %c0_i32 : i32
    %1 = arith.extui %0 : i1 to i32
    %c0_i32_0 = arith.constant 0 : i32
    %2 = arith.cmpi ne, %1, %c0_i32_0 : i32
    scf.if %2 {
      %c0_97 = arith.constant 0 : index
      %c0_98 = arith.constant 0 : index
      %c0_99 = arith.constant 0 : index
      %214 = vector.load %arg2[%c0_97, %c0_98, %c0_99] : memref<1x8x32xf32, #tpu.memory_space<vmem>>, vector<1x8x32xf32>
      %c0_100 = arith.constant 0 : index
      %c0_101 = arith.constant 0 : index
      %c0_102 = arith.constant 0 : index
      %215 = vector.load %arg15[%c0_100, %c0_101, %c0_102] : memref<1x8x32xf32, #tpu.memory_space<vmem>>, vector<1x8x32xf32>
      tpu.vector_store %arg15[%c0_100, %c0_101, %c0_102], %214 {strides = array<i32>} : memref<1x8x32xf32, #tpu.memory_space<vmem>>, vector<1x8x32xf32>,
    } else {
    }
    %c0 = arith.constant 0 : index
    %c0_1 = arith.constant 0 : index
    %c0_2 = arith.constant 0 : index
    %3 = vector.load %arg15[%c0, %c0_1, %c0_2] : memref<1x8x32xf32, #tpu.memory_space<vmem>>, vector<1x8x32xf32>
    %4 = vector.shape_cast %3 : vector<1x8x32xf32> to vector<8x32xf32>
    %c0_3 = arith.constant 0 : index
    %c0_4 = arith.constant 0 : index
    %c0_5 = arith.constant 0 : index
    %5 = vector.load %arg3[%c0_3, %c0_4, %c0_5] : memref<1x1x32xf32, #tpu.memory_space<vmem>>, vector<1x1x32xf32>
    %6 = vector.shape_cast %5 : vector<1x1x32xf32> to vector<1x32xf32>
    %c0_6 = arith.constant 0 : index
    %c0_7 = arith.constant 0 : index
    %c0_8 = arith.constant 0 : index
    %7 = vector.load %arg4[%c0_6, %c0_7, %c0_8] : memref<1x1x32xf32, #tpu.memory_space<vmem>>, vector<1x1x32xf32>
    %8 = vector.shape_cast %7 : vector<1x1x32xf32> to vector<1x32xf32>
    %cst = arith.constant dense<0.000000e+00> : vector<8xf32>
    %9 = vector.multi_reduction <add>, %4, %cst [1] : vector<8x32xf32> to vector<8xf32>
    %10 = vector.shape_cast %9 : vector<8xf32> to vector<8x1xf32>
    %cst_9 = arith.constant 3.200000e+01 : f32
    %11 = vector.broadcast %cst_9 : f32 to vector<8x1xf32>
    %12 = arith.divf %10, %11 : vector<8x1xf32>
    %13 = vector.broadcast %12 : vector<8x1xf32> to vector<8x32xf32>
    %14 = arith.subf %4, %13 : vector<8x32xf32>
    %15 = arith.mulf %14, %14 : vector<8x32xf32>
    %cst_10 = arith.constant dense<0.000000e+00> : vector<8xf32>
    %16 = vector.multi_reduction <add>, %15, %cst_10 [1] : vector<8x32xf32> to vector<8xf32>
    %17 = vector.shape_cast %16 : vector<8xf32> to vector<8x1xf32>
    %cst_11 = arith.constant 3.200000e+01 : f32
    %18 = vector.broadcast %cst_11 : f32 to vector<8x1xf32>
    %19 = arith.divf %17, %18 : vector<8x1xf32>
    %cst_12 = arith.constant 9.99999996E-13 : f32
    %20 = vector.broadcast %cst_12 : f32 to vector<8x1xf32>
    %21 = arith.addf %19, %20 : vector<8x1xf32>
    %22 = math.rsqrt %21 : vector<8x1xf32>
    %23 = vector.broadcast %22 : vector<8x1xf32> to vector<8x32xf32>
    %24 = arith.mulf %14, %23 : vector<8x32xf32>
    %25 = vector.broadcast %6 : vector<1x32xf32> to vector<8x32xf32>
    %26 = arith.mulf %24, %25 : vector<8x32xf32>
    %27 = vector.broadcast %8 : vector<1x32xf32> to vector<8x32xf32>
    %28 = arith.addf %26, %27 : vector<8x32xf32>
    %29 = arith.truncf %28 : vector<8x32xf32> to vector<8x32xbf16>
    %c0_13 = arith.constant 0 : index
    %c0_14 = arith.constant 0 : index
    %c0_15 = arith.constant 0 : index
    %30 = vector.load %arg5[%c0_13, %c0_14, %c0_15] : memref<1x32x96xbf16, #tpu.memory_space<vmem>>, vector<1x32x96xbf16>
    %31 = vector.shape_cast %30 : vector<1x32x96xbf16> to vector<32x96xbf16>
    %cst_16 = arith.constant dense<0.000000e+00> : vector<8x96xf32>
    %32 = tpu.matmul %29, %31, %cst_16 {dimension_numbers = #tpu.dot_dimension_numbers<[1], [0], [0], [1], [0, 0, 1, 1], [], []>} : vector<8x32xbf16>, vector<32x96xbf16>, vector<8x96xf32> -> vector<8x96xf32>
    %c0_17 = arith.constant 0 : index
    %c0_18 = arith.constant 0 : index
    %c0_19 = arith.constant 0 : index
    %33 = vector.load %arg6[%c0_17, %c0_18, %c0_19] : memref<1x1x96xf32, #tpu.memory_space<vmem>>, vector<1x1x96xf32>
    %34 = vector.shape_cast %33 : vector<1x1x96xf32> to vector<1x96xf32>
    %35 = vector.broadcast %34 : vector<1x96xf32> to vector<8x96xf32>
    %36 = arith.addf %32, %35 : vector<8x96xf32>
    %37 = vector.extract_strided_slice %36 {offsets = [0, 0], sizes = [8, 8], strides = [1, 1]} : vector<8x96xf32> to vector<8x8xf32>
    %38 = arith.truncf %37 : vector<8x8xf32> to vector<8x8xbf16>
    %39 = vector.extract_strided_slice %36 {offsets = [0, 32], sizes = [8, 8], strides = [1, 1]} : vector<8x96xf32> to vector<8x8xf32>
    %40 = arith.truncf %39 : vector<8x8xf32> to vector<8x8xbf16>
    %41 = vector.extract_strided_slice %36 {offsets = [0, 64], sizes = [8, 8], strides = [1, 1]} : vector<8x96xf32> to vector<8x8xf32>
    %42 = arith.truncf %41 : vector<8x8xf32> to vector<8x8xbf16>
    %cst_20 = arith.constant dense<0.000000e+00> : vector<8x8xf32>
    %43 = tpu.matmul %38, %40, %cst_20 {dimension_numbers = #tpu.dot_dimension_numbers<[1], [1], [0], [0], [0, 0, 1, 0], [], []>} : vector<8x8xbf16>, vector<8x8xbf16>, vector<8x8xf32> -> vector<8x8xf32>
    %cst_21 = arith.constant 0.353553385 : f32
    %44 = vector.broadcast %cst_21 : f32 to vector<8x8xf32>
    %45 = arith.mulf %43, %44 : vector<8x8xf32>
    %cst_22 = arith.constant dense<0xFF800000> : vector<8xf32>
    %46 = vector.multi_reduction <maximumf>, %45, %cst_22 [1] : vector<8x8xf32> to vector<8xf32>
    %47 = vector.shape_cast %46 : vector<8xf32> to vector<8x1xf32>
    %48 = vector.broadcast %47 : vector<8x1xf32> to vector<8x8xf32>
    %49 = arith.subf %45, %48 : vector<8x8xf32>
    %50 = math.exp %49 : vector<8x8xf32>
    %cst_23 = arith.constant dense<0.000000e+00> : vector<8xf32>
    %51 = vector.multi_reduction <add>, %50, %cst_23 [1] : vector<8x8xf32> to vector<8xf32>
    %52 = vector.shape_cast %51 : vector<8xf32> to vector<8x1xf32>
    %53 = vector.broadcast %52 : vector<8x1xf32> to vector<8x8xf32>
    %54 = arith.divf %50, %53 : vector<8x8xf32>
    %55 = arith.truncf %54 : vector<8x8xf32> to vector<8x8xbf16>
    %cst_24 = arith.constant dense<0.000000e+00> : vector<8x8xf32>
    %56 = tpu.matmul %55, %42, %cst_24 {dimension_numbers = #tpu.dot_dimension_numbers<[1], [0], [0], [1], [0, 0, 1, 1], [], []>} : vector<8x8xbf16>, vector<8x8xbf16>, vector<8x8xf32> -> vector<8x8xf32>
    %c0_25 = arith.constant 0 : index
    %c0_26 = arith.constant 0 : index
    %57 = vector.load %arg16[%c0_25, %c0_26] : memref<8x32xf32, #tpu.memory_space<vmem>>, vector<8x8xf32>
    tpu.vector_store %arg16[%c0_25, %c0_26], %56 {strides = array<i32>} : memref<8x32xf32, #tpu.memory_space<vmem>>, vector<8x8xf32>,
    %58 = vector.extract_strided_slice %36 {offsets = [0, 8], sizes = [8, 8], strides = [1, 1]} : vector<8x96xf32> to vector<8x8xf32>
    %59 = arith.truncf %58 : vector<8x8xf32> to vector<8x8xbf16>
    %60 = vector.extract_strided_slice %36 {offsets = [0, 40], sizes = [8, 8], strides = [1, 1]} : vector<8x96xf32> to vector<8x8xf32>
    %61 = arith.truncf %60 : vector<8x8xf32> to vector<8x8xbf16>
    %62 = vector.extract_strided_slice %36 {offsets = [0, 72], sizes = [8, 8], strides = [1, 1]} : vector<8x96xf32> to vector<8x8xf32>
    %63 = arith.truncf %62 : vector<8x8xf32> to vector<8x8xbf16>
    %cst_27 = arith.constant dense<0.000000e+00> : vector<8x8xf32>
    %64 = tpu.matmul %59, %61, %cst_27 {dimension_numbers = #tpu.dot_dimension_numbers<[1], [1], [0], [0], [0, 0, 1, 0], [], []>} : vector<8x8xbf16>, vector<8x8xbf16>, vector<8x8xf32> -> vector<8x8xf32>
    %cst_28 = arith.constant 0.353553385 : f32
    %65 = vector.broadcast %cst_28 : f32 to vector<8x8xf32>
    %66 = arith.mulf %64, %65 : vector<8x8xf32>
    %cst_29 = arith.constant dense<0xFF800000> : vector<8xf32>
    %67 = vector.multi_reduction <maximumf>, %66, %cst_29 [1] : vector<8x8xf32> to vector<8xf32>
    %68 = vector.shape_cast %67 : vector<8xf32> to vector<8x1xf32>
    %69 = vector.broadcast %68 : vector<8x1xf32> to vector<8x8xf32>
    %70 = arith.subf %66, %69 : vector<8x8xf32>
    %71 = math.exp %70 : vector<8x8xf32>
    %cst_30 = arith.constant dense<0.000000e+00> : vector<8xf32>
    %72 = vector.multi_reduction <add>, %71, %cst_30 [1] : vector<8x8xf32> to vector<8xf32>
    %73 = vector.shape_cast %72 : vector<8xf32> to vector<8x1xf32>
    %74 = vector.broadcast %73 : vector<8x1xf32> to vector<8x8xf32>
    %75 = arith.divf %71, %74 : vector<8x8xf32>
    %76 = arith.truncf %75 : vector<8x8xf32> to vector<8x8xbf16>
    %cst_31 = arith.constant dense<0.000000e+00> : vector<8x8xf32>
    %77 = tpu.matmul %76, %63, %cst_31 {dimension_numbers = #tpu.dot_dimension_numbers<[1], [0], [0], [1], [0, 0, 1, 1], [], []>} : vector<8x8xbf16>, vector<8x8xbf16>, vector<8x8xf32> -> vector<8x8xf32>
    %c0_32 = arith.constant 0 : index
    %c8 = arith.constant 8 : index
    %78 = vector.load %arg16[%c0_32, %c8] : memref<8x32xf32, #tpu.memory_space<vmem>>, vector<8x8xf32>
    tpu.vector_store %arg16[%c0_32, %c8], %77 {strides = array<i32>} : memref<8x32xf32, #tpu.memory_space<vmem>>, vector<8x8xf32>,
    %79 = vector.extract_strided_slice %36 {offsets = [0, 16], sizes = [8, 8], strides = [1, 1]} : vector<8x96xf32> to vector<8x8xf32>
    %80 = arith.truncf %79 : vector<8x8xf32> to vector<8x8xbf16>
    %81 = vector.extract_strided_slice %36 {offsets = [0, 48], sizes = [8, 8], strides = [1, 1]} : vector<8x96xf32> to vector<8x8xf32>
    %82 = arith.truncf %81 : vector<8x8xf32> to vector<8x8xbf16>
    %83 = vector.extract_strided_slice %36 {offsets = [0, 80], sizes = [8, 8], strides = [1, 1]} : vector<8x96xf32> to vector<8x8xf32>
    %84 = arith.truncf %83 : vector<8x8xf32> to vector<8x8xbf16>
    %cst_33 = arith.constant dense<0.000000e+00> : vector<8x8xf32>
    %85 = tpu.matmul %80, %82, %cst_33 {dimension_numbers = #tpu.dot_dimension_numbers<[1], [1], [0], [0], [0, 0, 1, 0], [], []>} : vector<8x8xbf16>, vector<8x8xbf16>, vector<8x8xf32> -> vector<8x8xf32>
    %cst_34 = arith.constant 0.353553385 : f32
    %86 = vector.broadcast %cst_34 : f32 to vector<8x8xf32>
    %87 = arith.mulf %85, %86 : vector<8x8xf32>
    %cst_35 = arith.constant dense<0xFF800000> : vector<8xf32>
    %88 = vector.multi_reduction <maximumf>, %87, %cst_35 [1] : vector<8x8xf32> to vector<8xf32>
    %89 = vector.shape_cast %88 : vector<8xf32> to vector<8x1xf32>
    %90 = vector.broadcast %89 : vector<8x1xf32> to vector<8x8xf32>
    %91 = arith.subf %87, %90 : vector<8x8xf32>
    %92 = math.exp %91 : vector<8x8xf32>
    %cst_36 = arith.constant dense<0.000000e+00> : vector<8xf32>
    %93 = vector.multi_reduction <add>, %92, %cst_36 [1] : vector<8x8xf32> to vector<8xf32>
    %94 = vector.shape_cast %93 : vector<8xf32> to vector<8x1xf32>
    %95 = vector.broadcast %94 : vector<8x1xf32> to vector<8x8xf32>
    %96 = arith.divf %92, %95 : vector<8x8xf32>
    %97 = arith.truncf %96 : vector<8x8xf32> to vector<8x8xbf16>
    %cst_37 = arith.constant dense<0.000000e+00> : vector<8x8xf32>
    %98 = tpu.matmul %97, %84, %cst_37 {dimension_numbers = #tpu.dot_dimension_numbers<[1], [0], [0], [1], [0, 0, 1, 1], [], []>} : vector<8x8xbf16>, vector<8x8xbf16>, vector<8x8xf32> -> vector<8x8xf32>
    %c0_38 = arith.constant 0 : index
    %c16 = arith.constant 16 : index
    %99 = vector.load %arg16[%c0_38, %c16] : memref<8x32xf32, #tpu.memory_space<vmem>>, vector<8x8xf32>
    tpu.vector_store %arg16[%c0_38, %c16], %98 {strides = array<i32>} : memref<8x32xf32, #tpu.memory_space<vmem>>, vector<8x8xf32>,
    %100 = vector.extract_strided_slice %36 {offsets = [0, 24], sizes = [8, 8], strides = [1, 1]} : vector<8x96xf32> to vector<8x8xf32>
    %101 = arith.truncf %100 : vector<8x8xf32> to vector<8x8xbf16>
    %102 = vector.extract_strided_slice %36 {offsets = [0, 56], sizes = [8, 8], strides = [1, 1]} : vector<8x96xf32> to vector<8x8xf32>
    %103 = arith.truncf %102 : vector<8x8xf32> to vector<8x8xbf16>
    %104 = vector.extract_strided_slice %36 {offsets = [0, 88], sizes = [8, 8], strides = [1, 1]} : vector<8x96xf32> to vector<8x8xf32>
    %105 = arith.truncf %104 : vector<8x8xf32> to vector<8x8xbf16>
    %cst_39 = arith.constant dense<0.000000e+00> : vector<8x8xf32>
    %106 = tpu.matmul %101, %103, %cst_39 {dimension_numbers = #tpu.dot_dimension_numbers<[1], [1], [0], [0], [0, 0, 1, 0], [], []>} : vector<8x8xbf16>, vector<8x8xbf16>, vector<8x8xf32> -> vector<8x8xf32>
    %cst_40 = arith.constant 0.353553385 : f32
    %107 = vector.broadcast %cst_40 : f32 to vector<8x8xf32>
    %108 = arith.mulf %106, %107 : vector<8x8xf32>
    %cst_41 = arith.constant dense<0xFF800000> : vector<8xf32>
    %109 = vector.multi_reduction <maximumf>, %108, %cst_41 [1] : vector<8x8xf32> to vector<8xf32>
    %110 = vector.shape_cast %109 : vector<8xf32> to vector<8x1xf32>
    %111 = vector.broadcast %110 : vector<8x1xf32> to vector<8x8xf32>
    %112 = arith.subf %108, %111 : vector<8x8xf32>
    %113 = math.exp %112 : vector<8x8xf32>
    %cst_42 = arith.constant dense<0.000000e+00> : vector<8xf32>
    %114 = vector.multi_reduction <add>, %113, %cst_42 [1] : vector<8x8xf32> to vector<8xf32>
    %115 = vector.shape_cast %114 : vector<8xf32> to vector<8x1xf32>
    %116 = vector.broadcast %115 : vector<8x1xf32> to vector<8x8xf32>
    %117 = arith.divf %113, %116 : vector<8x8xf32>
    %118 = arith.truncf %117 : vector<8x8xf32> to vector<8x8xbf16>
    %cst_43 = arith.constant dense<0.000000e+00> : vector<8x8xf32>
    %119 = tpu.matmul %118, %105, %cst_43 {dimension_numbers = #tpu.dot_dimension_numbers<[1], [0], [0], [1], [0, 0, 1, 1], [], []>} : vector<8x8xbf16>, vector<8x8xbf16>, vector<8x8xf32> -> vector<8x8xf32>
    %c0_44 = arith.constant 0 : index
    %c24 = arith.constant 24 : index
    %120 = vector.load %arg16[%c0_44, %c24] : memref<8x32xf32, #tpu.memory_space<vmem>>, vector<8x8xf32>
    tpu.vector_store %arg16[%c0_44, %c24], %119 {strides = array<i32>} : memref<8x32xf32, #tpu.memory_space<vmem>>, vector<8x8xf32>,
    %c0_45 = arith.constant 0 : index
    %c0_46 = arith.constant 0 : index
    %121 = vector.load %arg16[%c0_45, %c0_46] : memref<8x32xf32, #tpu.memory_space<vmem>>, vector<8x32xf32>
    %122 = arith.truncf %121 : vector<8x32xf32> to vector<8x32xbf16>
    %c0_47 = arith.constant 0 : index
    %c0_48 = arith.constant 0 : index
    %c0_49 = arith.constant 0 : index
    %123 = vector.load %arg7[%c0_47, %c0_48, %c0_49] : memref<1x32x32xbf16, #tpu.memory_space<vmem>>, vector<1x32x32xbf16>
    %124 = vector.shape_cast %123 : vector<1x32x32xbf16> to vector<32x32xbf16>
    %cst_50 = arith.constant dense<0.000000e+00> : vector<8x32xf32>
    %125 = tpu.matmul %122, %124, %cst_50 {dimension_numbers = #tpu.dot_dimension_numbers<[1], [0], [0], [1], [0, 0, 1, 1], [], []>} : vector<8x32xbf16>, vector<32x32xbf16>, vector<8x32xf32> -> vector<8x32xf32>
    %c0_51 = arith.constant 0 : index
    %c0_52 = arith.constant 0 : index
    %c0_53 = arith.constant 0 : index
    %126 = vector.load %arg8[%c0_51, %c0_52, %c0_53] : memref<1x1x32xf32, #tpu.memory_space<vmem>>, vector<1x1x32xf32>
    %127 = vector.shape_cast %126 : vector<1x1x32xf32> to vector<1x32xf32>
    %128 = vector.broadcast %127 : vector<1x32xf32> to vector<8x32xf32>
    %129 = arith.addf %125, %128 : vector<8x32xf32>
    %130 = arith.addf %4, %129 : vector<8x32xf32>
    %c0_54 = arith.constant 0 : index
    %c0_55 = arith.constant 0 : index
    %c0_56 = arith.constant 0 : index
    %131 = vector.load %arg9[%c0_54, %c0_55, %c0_56] : memref<1x1x32xf32, #tpu.memory_space<vmem>>, vector<1x1x32xf32>
    %132 = vector.shape_cast %131 : vector<1x1x32xf32> to vector<1x32xf32>
    %c0_57 = arith.constant 0 : index
    %c0_58 = arith.constant 0 : index
    %c0_59 = arith.constant 0 : index
    %133 = vector.load %arg10[%c0_57, %c0_58, %c0_59] : memref<1x1x32xf32, #tpu.memory_space<vmem>>, vector<1x1x32xf32>
    %134 = vector.shape_cast %133 : vector<1x1x32xf32> to vector<1x32xf32>
    %cst_60 = arith.constant dense<0.000000e+00> : vector<8xf32>
    %135 = vector.multi_reduction <add>, %130, %cst_60 [1] : vector<8x32xf32> to vector<8xf32>
    %136 = vector.shape_cast %135 : vector<8xf32> to vector<8x1xf32>
    %cst_61 = arith.constant 3.200000e+01 : f32
    %137 = vector.broadcast %cst_61 : f32 to vector<8x1xf32>
    %138 = arith.divf %136, %137 : vector<8x1xf32>
    %139 = vector.broadcast %138 : vector<8x1xf32> to vector<8x32xf32>
    %140 = arith.subf %130, %139 : vector<8x32xf32>
    %141 = arith.mulf %140, %140 : vector<8x32xf32>
    %cst_62 = arith.constant dense<0.000000e+00> : vector<8xf32>
    %142 = vector.multi_reduction <add>, %141, %cst_62 [1] : vector<8x32xf32> to vector<8xf32>
    %143 = vector.shape_cast %142 : vector<8xf32> to vector<8x1xf32>
    %cst_63 = arith.constant 3.200000e+01 : f32
    %144 = vector.broadcast %cst_63 : f32 to vector<8x1xf32>
    %145 = arith.divf %143, %144 : vector<8x1xf32>
    %cst_64 = arith.constant 9.99999996E-13 : f32
    %146 = vector.broadcast %cst_64 : f32 to vector<8x1xf32>
    %147 = arith.addf %145, %146 : vector<8x1xf32>
    %148 = math.rsqrt %147 : vector<8x1xf32>
    %149 = vector.broadcast %148 : vector<8x1xf32> to vector<8x32xf32>
    %150 = arith.mulf %140, %149 : vector<8x32xf32>
    %151 = vector.broadcast %132 : vector<1x32xf32> to vector<8x32xf32>
    %152 = arith.mulf %150, %151 : vector<8x32xf32>
    %153 = vector.broadcast %134 : vector<1x32xf32> to vector<8x32xf32>
    %154 = arith.addf %152, %153 : vector<8x32xf32>
    %155 = arith.truncf %154 : vector<8x32xf32> to vector<8x32xbf16>
    %c0_65 = arith.constant 0 : index
    %c0_66 = arith.constant 0 : index
    %c0_67 = arith.constant 0 : index
    %156 = vector.load %arg11[%c0_65, %c0_66, %c0_67] : memref<1x32x128xbf16, #tpu.memory_space<vmem>>, vector<1x32x128xbf16>
    %157 = vector.shape_cast %156 : vector<1x32x128xbf16> to vector<32x128xbf16>
    %cst_68 = arith.constant dense<0.000000e+00> : vector<8x128xf32>
    %158 = tpu.matmul %155, %157, %cst_68 {dimension_numbers = #tpu.dot_dimension_numbers<[1], [0], [0], [1], [0, 0, 1, 1], [], []>} : vector<8x32xbf16>, vector<32x128xbf16>, vector<8x128xf32> -> vector<8x128xf32>
    %c0_69 = arith.constant 0 : index
    %c0_70 = arith.constant 0 : index
    %c0_71 = arith.constant 0 : index
    %159 = vector.load %arg12[%c0_69, %c0_70, %c0_71] : memref<1x1x128xf32, #tpu.memory_space<vmem>>, vector<1x1x128xf32>
    %160 = vector.shape_cast %159 : vector<1x1x128xf32> to vector<1x128xf32>
    %161 = vector.broadcast %160 : vector<1x128xf32> to vector<8x128xf32>
    %162 = arith.addf %158, %161 : vector<8x128xf32>
    %cst_72 = arith.constant 5.000000e-01 : f32
    %163 = vector.broadcast %cst_72 : f32 to vector<8x128xf32>
    %164 = arith.mulf %162, %163 : vector<8x128xf32>
    %cst_73 = arith.constant 0.707106769 : f32
    %165 = vector.broadcast %cst_73 : f32 to vector<8x128xf32>
    %166 = arith.mulf %162, %165 : vector<8x128xf32>
    %cst_74 = arith.constant 0.000000e+00 : f32
    %167 = vector.broadcast %cst_74 : f32 to vector<8x128xf32>
    %168 = arith.cmpf oge, %166, %167 : vector<8x128xf32>
    %cst_75 = arith.constant 1.000000e+00 : f32
    %cst_76 = arith.constant -1.000000e+00 : f32
    %169 = vector.broadcast %cst_75 : f32 to vector<8x128xf32>
    %170 = vector.broadcast %cst_76 : f32 to vector<8x128xf32>
    %171 = arith.select %168, %169, %170 : vector<8x128xi1>, vector<8x128xf32>
    %172 = math.absf %166 : vector<8x128xf32>
    %cst_77 = arith.constant 0.327591091 : f32
    %173 = vector.broadcast %cst_77 : f32 to vector<8x128xf32>
    %174 = arith.mulf %173, %172 : vector<8x128xf32>
    %cst_78 = arith.constant 1.000000e+00 : f32
    %175 = vector.broadcast %cst_78 : f32 to vector<8x128xf32>
    %176 = arith.addf %175, %174 : vector<8x128xf32>
    %177 = tpu.reciprocal %176 {approx = true} : vector<8x128xf32> -> vector<8x128xf32>
    %cst_79 = arith.constant 1.06140542 : f32
    %178 = vector.broadcast %cst_79 : f32 to vector<8x128xf32>
    %179 = arith.mulf %177, %178 : vector<8x128xf32>
    %cst_80 = arith.constant -1.45315206 : f32
    %180 = vector.broadcast %cst_80 : f32 to vector<8x128xf32>
    %181 = arith.addf %180, %179 : vector<8x128xf32>
    %182 = arith.mulf %177, %181 : vector<8x128xf32>
    %cst_81 = arith.constant 1.42141378 : f32
    %183 = vector.broadcast %cst_81 : f32 to vector<8x128xf32>
    %184 = arith.addf %183, %182 : vector<8x128xf32>
    %185 = arith.mulf %177, %184 : vector<8x128xf32>
    %cst_82 = arith.constant -0.284496725 : f32
    %186 = vector.broadcast %cst_82 : f32 to vector<8x128xf32>
    %187 = arith.addf %186, %185 : vector<8x128xf32>
    %188 = arith.mulf %177, %187 : vector<8x128xf32>
    %cst_83 = arith.constant 0.254829586 : f32
    %189 = vector.broadcast %cst_83 : f32 to vector<8x128xf32>
    %190 = arith.addf %189, %188 : vector<8x128xf32>
    %191 = arith.mulf %177, %190 : vector<8x128xf32>
    %cst_84 = arith.constant 0.000000e+00 : f32
    %192 = vector.broadcast %cst_84 : f32 to vector<8x128xf32>
    %193 = arith.subf %192, %172 : vector<8x128xf32>
    %194 = arith.mulf %193, %172 : vector<8x128xf32>
    %195 = math.exp %194 : vector<8x128xf32>
    %196 = arith.mulf %191, %195 : vector<8x128xf32>
    %cst_85 = arith.constant 1.000000e+00 : f32
    %197 = vector.broadcast %cst_85 : f32 to vector<8x128xf32>
    %198 = arith.subf %197, %196 : vector<8x128xf32>
    %199 = arith.mulf %171, %198 : vector<8x128xf32>
    %cst_86 = arith.constant 1.000000e+00 : f32
    %200 = vector.broadcast %cst_86 : f32 to vector<8x128xf32>
    %201 = arith.addf %200, %199 : vector<8x128xf32>
    %202 = arith.mulf %164, %201 : vector<8x128xf32>
    %203 = arith.truncf %202 : vector<8x128xf32> to vector<8x128xbf16>
    %c0_87 = arith.constant 0 : index
    %c0_88 = arith.constant 0 : index
    %c0_89 = arith.constant 0 : index
    %204 = vector.load %arg13[%c0_87, %c0_88, %c0_89] : memref<1x128x32xbf16, #tpu.memory_space<vmem>>, vector<1x128x32xbf16>
    %205 = vector.shape_cast %204 : vector<1x128x32xbf16> to vector<128x32xbf16>
    %cst_90 = arith.constant dense<0.000000e+00> : vector<8x32xf32>
    %206 = tpu.matmul %203, %205, %cst_90 {dimension_numbers = #tpu.dot_dimension_numbers<[1], [0], [0], [1], [0, 0, 1, 1], [], []>} : vector<8x128xbf16>, vector<128x32xbf16>, vector<8x32xf32> -> vector<8x32xf32>
    %c0_91 = arith.constant 0 : index
    %c0_92 = arith.constant 0 : index
    %c0_93 = arith.constant 0 : index
    %207 = vector.load %arg14[%c0_91, %c0_92, %c0_93] : memref<1x1x32xf32, #tpu.memory_space<vmem>>, vector<1x1x32xf32>
    %208 = vector.shape_cast %207 : vector<1x1x32xf32> to vector<1x32xf32>
    %209 = vector.broadcast %208 : vector<1x32xf32> to vector<8x32xf32>
    %210 = arith.addf %206, %209 : vector<8x32xf32>
    %211 = arith.addf %130, %210 : vector<8x32xf32>
    %212 = vector.shape_cast %211 : vector<8x32xf32> to vector<1x8x32xf32>
    %c0_94 = arith.constant 0 : index
    %c0_95 = arith.constant 0 : index
    %c0_96 = arith.constant 0 : index
    %213 = vector.load %arg15[%c0_94, %c0_95, %c0_96] : memref<1x8x32xf32, #tpu.memory_space<vmem>>, vector<1x8x32xf32>
    tpu.vector_store %arg15[%c0_94, %c0_95, %c0_96], %212 {strides = array<i32>} : memref<1x8x32xf32, #tpu.memory_space<vmem>>, vector<1x8x32xf32>,
    return
  }
  func.func @transform_0(%arg0: i32, %arg1: i32) -> (i32, i32, i32) {
    %c0_i32 = arith.constant 0 : i32
    %c0_i32_0 = arith.constant 0 : i32
    %c0_i32_1 = arith.constant 0 : i32
    return %arg0, %c0_i32, %c0_i32_0 : i32, i32, i32
  }
  func.func @transform_1(%arg0: i32, %arg1: i32) -> (i32, i32, i32) {
    %c0_i32 = arith.constant 0 : i32
    %c0_i32_0 = arith.constant 0 : i32
    %c0_i32_1 = arith.constant 0 : i32
    return %arg1, %c0_i32, %c0_i32_0 : i32, i32, i32
  }
  func.func @transform_2(%arg0: i32, %arg1: i32) -> (i32, i32, i32) {
    %c0_i32 = arith.constant 0 : i32
    %c0_i32_0 = arith.constant 0 : i32
    %c0_i32_1 = arith.constant 0 : i32
    return %arg1, %c0_i32, %c0_i32_0 : i32, i32, i32
  }
  func.func @transform_3(%arg0: i32, %arg1: i32) -> (i32, i32, i32) {
    %c0_i32 = arith.constant 0 : i32
    %c0_i32_0 = arith.constant 0 : i32
    %c0_i32_1 = arith.constant 0 : i32
    return %arg1, %c0_i32, %c0_i32_0 : i32, i32, i32
  }
  func.func @transform_4(%arg0: i32, %arg1: i32) -> (i32, i32, i32) {
    %c0_i32 = arith.constant 0 : i32
    %c0_i32_0 = arith.constant 0 : i32
    %c0_i32_1 = arith.constant 0 : i32
    return %arg1, %c0_i32, %c0_i32_0 : i32, i32, i32
  }
  func.func @transform_5(%arg0: i32, %arg1: i32) -> (i32, i32, i32) {
    %c0_i32 = arith.constant 0 : i32
    %c0_i32_0 = arith.constant 0 : i32
    %c0_i32_1 = arith.constant 0 : i32
    return %arg1, %c0_i32, %c0_i32_0 : i32, i32, i32
  }
  func.func @transform_6(%arg0: i32, %arg1: i32) -> (i32, i32, i32) {
    %c0_i32 = arith.constant 0 : i32
    %c0_i32_0 = arith.constant 0 : i32
    %c0_i32_1 = arith.constant 0 : i32
    return %arg1, %c0_i32, %c0_i32_0 : i32, i32, i32
  }
  func.func @transform_7(%arg0: i32, %arg1: i32) -> (i32, i32, i32) {
    %c0_i32 = arith.constant 0 : i32
    %c0_i32_0 = arith.constant 0 : i32
    %c0_i32_1 = arith.constant 0 : i32
    return %arg1, %c0_i32, %c0_i32_0 : i32, i32, i32
  }
  func.func @transform_8(%arg0: i32, %arg1: i32) -> (i32, i32, i32) {
    %c0_i32 = arith.constant 0 : i32
    %c0_i32_0 = arith.constant 0 : i32
    %c0_i32_1 = arith.constant 0 : i32
    return %arg1, %c0_i32, %c0_i32_0 : i32, i32, i32
  }
  func.func @transform_9(%arg0: i32, %arg1: i32) -> (i32, i32, i32) {
    %c0_i32 = arith.constant 0 : i32
    %c0_i32_0 = arith.constant 0 : i32
    %c0_i32_1 = arith.constant 0 : i32
    return %arg1, %c0_i32, %c0_i32_0 : i32, i32, i32
  }
  func.func @transform_10(%arg0: i32, %arg1: i32) -> (i32, i32, i32) {
    %c0_i32 = arith.constant 0 : i32
    %c0_i32_0 = arith.constant 0 : i32
    %c0_i32_1 = arith.constant 0 : i32
    return %arg1, %c0_i32, %c0_i32_0 : i32, i32, i32
  }
  func.func @transform_11(%arg0: i32, %arg1: i32) -> (i32, i32, i32) {
    %c0_i32 = arith.constant 0 : i32
    %c0_i32_0 = arith.constant 0 : i32
    %c0_i32_1 = arith.constant 0 : i32
    return %arg1, %c0_i32, %c0_i32_0 : i32, i32, i32
  }
  func.func @transform_12(%arg0: i32, %arg1: i32) -> (i32, i32, i32) {
    %c0_i32 = arith.constant 0 : i32
    %c0_i32_0 = arith.constant 0 : i32
    %c0_i32_1 = arith.constant 0 : i32
    return %arg1, %c0_i32, %c0_i32_0 : i32, i32, i32
  }
  func.func @transform_13(%arg0: i32, %arg1: i32) -> (i32, i32, i32) {
    %c0_i32 = arith.constant 0 : i32
    %c0_i32_0 = arith.constant 0 : i32
    %c0_i32_1 = arith.constant 0 : i32
    return %arg0, %c0_i32, %c0_i32_0 : i32, i32, i32
  }
}

</mosaic_0001>

<bundles_post_ra>
// kernel: tpu_custom_call.1
= control target key start
LH: loop header
LB: loop body
LE: loop exit
PB: predicated region body
PF: predicated region fallthrough
CT: control target
= control target key end

     0   :  { %s2572_s0 = inlined_call_operand.vmem [shape: f32[2,8,32], index: 0, kind: input, shape index: {}]   ;;  %s2573_s1 = inlined_call_operand.vmem [shape: f32[2,1,32], index: 1, kind: input, shape index: {}]   ;;  %s2574_s2 = inlined_call_operand.vmem [shape: f32[2,1,32], index: 2, kind: input, shape index: {}]   ;;  %s2575_s3 = inlined_call_operand.vmem [shape: bf16[2,32,96], index: 3, kind: input, shape index: {}]   ;;  %s2576_s4 = inlined_call_operand.vmem [shape: f32[2,1,96], index: 4, kind: input, shape index: {}]   ;;  %s2577_s5 = inlined_call_operand.vmem [shape: bf16[2,32,32], index: 5, kind: input, shape index: {}]   ;;  %s2578_s6 = inlined_call_operand.vmem [shape: f32[2,1,32], index: 6, kind: input, shape index: {}]   ;;  %s2579_s7 = inlined_call_operand.vmem [shape: f32[2,1,32], index: 7, kind: input, shape index: {}]   ;;  %s2580_s8 = inlined_call_operand.vmem [shape: f32[2,1,32], index: 8, kind: input, shape index: {}]   ;;  %s2581_s9 = inlined_call_operand.vmem [shape: bf16[2,32,128], index: 9, kind: input, shape index: {}]   ;;  %s2582_s10 = inlined_call_operand.vmem [shape: f32[2,1,128], index: 10, kind: input, shape index: {}]   ;;  %s2583_s11 = inlined_call_operand.vmem [shape: bf16[2,128,32], index: 11, kind: input, shape index: {}]   ;;  %s2584_s12 = inlined_call_operand.vmem [shape: f32[2,1,32], index: 12, kind: input, shape index: {}]   ;;  %s2585_s13 = inlined_call_operand.hbm [shape: f32[2,8,32], index: 13, kind: output, shape index: {}]  }
   0x1   :  { %2601 = sst [smem:[#allocation19_spill]] %s2572_s0 }
   0x2   :  { %2602 = sst [smem:[#allocation20_spill]] %s2575_s3 }
   0x3   :  { %2603 = sst [smem:[#allocation21_spill]] %s2577_s5 }
   0x4   :  { %2604 = sst [smem:[#allocation22_spill]] %s2579_s7 }
   0x5   :  { %2605 = sst [smem:[#allocation23_spill]] %s2583_s11 }
   0x6   :  { %2606 = sst [smem:[#allocation24_spill]] %s2585_s13 }
   0x7   :  { %18 = vsyncpa [#allocation4], 0 }
   0x8   :  { %20 = vsyncpa [#allocation4 + $0x1], 0  ;;  %s2214_s25 = smov 0   ;;  %s2216_s26 = smov 0  }
   0x9   :  { %s2218_s27 = smov 0   ;;  %s2220_s28 = smov 0  }
   0xa   :  { %s2222_s29 = smov 0   ;;  %s2224_s30 = smov 0  }
   0xb   :  { %s2226_s14 = smov 0   ;;  %s2228_s15 = smov 0  }
   0xc LB: > { %2607 = sst [smem:[#allocation6_spill]] %s2096_s25  ;;  %s1721_s16 = sadd.s32 4294967295, %s2124_s15   ;;  %s2124_s15 = sphi %s2228_s15, %s26_s15   ;;  %s2120_s14 = sphi %s2226_s14, %s2648_s14   ;;  %s2116_s30 = sphi %s2224_s30, %s2647_s30   ;;  %s2112_s29 = sphi %s2222_s29, %s2646_s29   ;;  %s2108_s28 = sphi %s2220_s28, %s2645_s28   ;;  %s2104_s27 = sphi %s2218_s27, %s2644_s27   ;;  %s2100_s26 = sphi %s2216_s26, %s2643_s26   ;;  %s2096_s25 = sphi %s2214_s25, %s2642_s25  }
   0xd   : > { %2608 = sst [smem:[#allocation7_spill]] %s2100_s26  ;;  %s1722_s17 = sadd.s32 4294967294, %s2124_s15  }
   0xe   : > { %2609 = sst [smem:[#allocation8_spill]] %s2104_s27  ;;  %s35_s18 = sadd.s32 1, %s2116_s30 }
   0xf   : > { %2610 = sst [smem:[#allocation9_spill]] %s2108_s28  ;;  %p36_p0 = scmp.ge.s32.totalorder %s35_s18, 2 }
  0x10   : > { %2611 = sst [smem:[#allocation10_spill]] %s2112_s29  ;;  %s38_s19 = sadd.s32 1, %s2120_s14 }
  0x11   : > { %2612 = sst [smem:[#allocation11_spill]] %s2116_s30  ;;  %p393_p1 = scmp.ne.s32.totalorder %s2104_s27, %s2100_s26 }
  0x12   : > { %2613 = sst [smem:[#allocation12_spill]] %s2120_s14  ;;  %p394_p2 = scmp.eq.s32.totalorder %s1721_s16, 3 }
  0x13   : > { %2614 = sst [smem:[#allocation13_spill]] %s2124_s15  ;;  %s2650_s18 = smov (%p36_p0, %s35_s18), 0 }
  0x14   : > { %2615 = sst [smem:[#allocation14_spill]] %s2650_s18  ;;  %s2652_s19 = smov (!%p36_p0, %s38_s19), %s2120_s14 }
  0x15   : > { %p2263_p3 = por %p394_p2, %p393_p1  ;;  %p399_p4 = scmp.ne.s32.totalorder %s2100_s26, %s2096_s25 }
  0x16   : > { %p40_p5 = scmp.ge.s32.totalorder %s2652_s19, 2  ;;  %p400_p6 = scmp.eq.s32.totalorder %s1722_s17, 3 }
  0x17   : > { %s2616_s20 = scalar_select %p2263_p3, 1, 0 }
  0x18   : > { %p1725_p7 = scmp.ge.s32.totalorder %s2124_s15, 1  ;;  %p505_p8 = scmp.lt.s32.totalorder %s2124_s15, 5 }
  0x19   : > { %2617 = sst [smem:[#allocation15_spill]] %s2616_s20  ;;  %s2654_s19 = smov (%p40_p5, %s2652_s19), 0 }
  0x1a   : > { %2618 = sst [smem:[#allocation16_spill]] %s2654_s19  ;;  %p2273_p9 = por %p400_p6, %p399_p4 }
  0x1b   : > { %p506_p10 = pnand %p1725_p7, %p505_p8  ;;  %s380_s22 = ssub.s32 %s2120_s14, %s2654_s19 }
  0x1c   : > { %s2619_s21 = scalar_select %p2273_p9, 1, 0 }
  0x1d   : > { %s383_s23 = sadd.s32 1, %s2104_s27  ;;  %p381_p11 = scmp.eq.s32.totalorder %s380_s22, 0 }
  0x1e   : > { %2620 = sst [smem:[#allocation17_spill]] %s2619_s21  ;;  %509 = sbr.rel (%p506_p10) target bundleno = 2661 (0xa65), region = 72 }
  0x1f   : > { %s2281_s24 = scalar_select %p381_p11, %s2104_s27, %s383_s23  }
  0x20   : > { %s2589_s16 = sand.u32 (!%p506_p10), 1, %s2100_s26   ;;  %p592_p12 = scmp.lt.s32.totalorder (!%p506_p10), %s2112_s29, 1 }
  0x21   : > { %2621 = sst [smem:[#allocation18_spill]] %s2281_s24  ;;  %s1726_s17 = sshll.u32 (!%p506_p10), %s2589_s16, 3 }
  0x22   : > { %p596_p13 = scmp.lt.s32.totalorder (!%p506_p10), %s2108_s28, 1  ;;  %s2622_s0 = sld [smem:[#allocation19_spill]] (!%p506_p10) }
  0x23   : > { %s2623_s3 = sld [smem:[#allocation20_spill]] (!%p506_p10)  ;;  %s2624_s5 = sld [smem:[#allocation21_spill]] (!%p506_p10) }
  0x24   : > { %s2626_s27 = sld [smem:[#allocation23_spill]] (!%p506_p10)  ;;  %s2349_s26 = scalar_lea.vmem (!%p506_p10), [#allocation3], %s1726_s17 }
  0x25   : > { %s593_s18 = scalar_select %p592_p12, %s2112_s29, 1 }
  0x26   : > { %s2290_s30 = scalar_select %p596_p13, %s2108_s28, 1 }
  0x27   : > { %s1727_s22 = sshll.u32 %s593_s18, 3  ;;  %s2627_s20 = sld [smem:[#allocation9_spill]] }
  0x28   : > { %s595_s14 = scalar_lea.vmem %s2622_s0, %s1727_s22  ;;  %s1774_s13 = sshll.u32 %s2290_s30, 4 }
  0x29   : > { %s2307_s29 = scalar_lea.vmem %s2623_s3, %s1774_s13  ;;  %s2316_s23 = scalar_lea.vmem %s2624_s5, %s1774_s13 }
  0x2a   : > { %s623_s0 = scalar_lea.vmem %s2580_s8, %s2290_s30  ;;  %s2333_s18 = scalar_lea.vmem %s2581_s9, %s1774_s13 }
  0x2b   : > { %s631_s11 = scalar_lea.vmem %s2582_s10, %s2290_s30  ;;  %s1777_s5 = sshll.u32 %s2290_s30, 6 }
  0x2c   : > { %s639_s25 = scalar_lea.vmem %s2584_s12, %s2290_s30  ;;  %s2347_s7 = scalar_lea.vmem %s2626_s27, %s1777_s5 }
  0x2d   : > { %p1736_p0 = scmp.ne.s32.totalorder %s2627_s20, 0 }
  0x2e   : > { %v645_v0 = vld [vmem:[%s595_s14] sm:$0xff] (!%p1736_p0)  ;;  %vm646_vm0 = vcmask (!%p1736_p0), 261120  }
  0x2f   : > { %644 = sbr.rel (%p1736_p0) target bundleno = 54 (0x36), region = 76  ;;  %647 = vst.msk [vmem:[%s2349_s26] sm:$0xff] (!%p1736_p0), %vm646_vm0, %v645_v0 }
  0x36 PF: > { %v2354_v1 = vld [vmem:[%s2349_s26] sm:$0xff]  ;;  %vm651_vm1 = vcmask 261120   ;;  %v1992_v8 = vld [vmem:[%s2307_s29] sm:$0xff]   ;;  %v2126_v9 = vmov 0.0   ;;  %vm2127_vm2 = vmmov 0   ;;  %s2628_s13 = scalar_lea.vmem %s2573_s1, %s2290_s30  ;;  %s2629_s14 = scalar_lea.vmem %s2574_s2, %s2290_s30  ;;  %vm751_vm3 = vcmask 64512  }
  0x37   : > { %v652_v2 = vsel %vm651_vm1, %v2354_v1, 0.0  ;;  %1812 = vmatprep.subr.bf16.mxu0 %v2126_v9  ;;  %1816 = vmatprep.mubr.msk.bf16.mxu0 %vm2127_vm2, %v2126_v9  ;;  %v1993_v10 = vld [vmem:[%s2307_s29 + $0x8] sm:$0xff]   ;;  %v1737_v15 = vld [vmem:[%s2628_s13] ss:$0 sm:$0xff]  ;;  %s2630_s19 = scalar_lea.vmem %s2576_s4, %s2290_s30  ;;  %s2128_s22 = smov 120   ;;  %vm816_vm4 = vcmask 1043456  }
  0x38   : > { %653 = vadd.xlane.f32.xlu0 %v652_v2  ;;  %1813 = vmatpush3.bf16.msra.mxu0 %v1992_v8  ;;  %v1738_v17 = vld [vmem:[%s2629_s14] ss:$0 sm:$0xff]  ;;  %s2129_s24 = smov 96   ;;  %s2130_s16 = smov 88   ;;  %vm976_vm5 = vcmask 130112   ;;  %vm1093_vm6 = vcmask 195712  }
  0x39   : > { %1832 = vmatprep.subr.bf16.mxu1 %v2126_v9  ;;  %1814 = vmatprep.subr.bf16.mxu0 %v2126_v9  ;;  %v1739_v21 = vld [vmem:[%s2630_s19] ss:$0 sm:$0xff]  ;;  %s2131_s15 = smov 80   ;;  %s2132_s21 = smov 112   ;;  %vm1210_vm7 = vcmask 261312  }
  0x3a   : > { %1834 = vmatprep.mubr.msk.bf16.mxu1 %vm2127_vm2, %v2126_v9  ;;  %s2133_s20 = smov 72   ;;  %s2134_s3 = smov 104  }
  0x3b   : > { %s2135_s5 = smov 64   ;;  %s2136_s13 = smov 56  }
  0x3c   : > { %1815 = vmatpush3.bf16.msra.mxu0 %v1993_v10  ;;  %s2137_s27 = smov 48   ;;  %s2138_s29 = smov 40  }
  0x3d   : > { %1820 = vmatprep.subr.bf16.mxu0 %v2126_v9  ;;  %s2139_s14 = smov 8   ;;  %s2140_s17 = smov 16  }
  0x3e   : > { %s2141_s28 = smov 24  }
  0xc5   : > { %v654_v3 = vpop.xlane.xlu0 %653 }
  0xc6   : > { %v656_v4 = vmul.f32 0.03125, %v654_v3 }
  0xc8   : > { %v657_v5 = vsub.f32 %v2354_v1, %v656_v4 }
  0xca   : > { %v658_v6 = vmul.f32 %v657_v5, %v657_v5 }
  0xcc   : > { %v659_v7 = vsel %vm651_vm1, %v658_v6, 0.0 }
  0xcd   : > { %660 = vadd.xlane.f32.xlu0 %v659_v7 }
 0x15a   : > { %v661_v11 = vpop.xlane.xlu0 %660 }
 0x15b   : > { %v662_v12 = vmul.f32 0.03125, %v661_v11 }
 0x15d   : > { %v663_v13 = vadd.f32 1e-12, %v662_v12 }
 0x15f   : > { %2006 = vrsqrt.f32 %v663_v13 }
 0x169   : > { %v2007_v14 = vpop.eup %2006 }
 0x16a   : > { %v665_v16 = vmul.f32 %v2007_v14, %v657_v5 }
 0x16c   : > { %v672_v18 = vmul.f32 %v1737_v15, %v665_v16 }
 0x16e   : > { %v679_v19 = vadd.f32 %v1738_v17, %v672_v18 }
 0x170   : > { %v680_v20 = vpack.c.bf16 %v679_v19, %v679_v19 }
 0x172   : > { %1817 = vmatmul.mubr.msk.bf16.vlgmr.msra.gmra.mrb[0].mxu0 %vm651_vm1, %v680_v20 }
 0x173   : > { %1822 = vmatprep.mubr.msk.bf16.mxu0 %vm2127_vm2, %v2126_v9 }
 0x245   : > { %v741_v22 = vpop.f32.mrb[0].mxu0 }
 0x246   : > { %v742_v23 = vadd.f32 %v1739_v21, %v741_v22  ;;  %v1818_v24 = vpop.f32.mrb[1].mxu0 }
 0x247   : > { %v744_v25 = vpop.f32.mrb[2].mxu0 }
 0x248   : > { %v2388_v26 = vpack.c.bf16 %v742_v23, %v742_v23  ;;  %v1819_v27 = vpop.f32.mrb[3].mxu0 }
 0x24a   : > { %861 = vrot.lane.b32.xlu0 %v2388_v26, %s2128_s22  ;;  %749 = vrot.lane.b32.xlu1 %v2388_v26, %s2129_s24  ;;  %s2631_s22 = scalar_lea.vmem %s2578_s6, %s2290_s30  ;;  %s2143_s24 = smov [#allocation3]  }
 0x24e   : > { %863 = vrot.lane.b32.xlu1 %v2388_v26, %s2130_s16  ;;  %s2034_s16 = sshll.u32 %s2143_s24, 4  ;;  %s2035_s16 = int_to_ptr.vmem [resolvable:$false] %s2034_s16 }
 0x252   : > { %980 = vrot.lane.b32.xlu1 %v2388_v26, %s2131_s15  ;;  %s2632_s15 = sld [smem:[#allocation22_spill]] }
 0x256   : > { %978 = vrot.lane.b32.xlu1 %v2388_v26, %s2132_s21 }
 0x258   : > { %s2633_s21 = scalar_lea.vmem %s2632_s15, %s2290_s30  ;;  %s2036_s15 = scalar_lea.vmem %s2035_s16, 256 }
 0x25a   : > { %1097 = vrot.lane.b32.xlu1 %v2388_v26, %s2133_s20 }
 0x25e   : > { %1095 = vrot.lane.b32.xlu1 %v2388_v26, %s2134_s3 }
 0x2bc   : > { %v750_v28 = vpop.permute.xlu1 %749  ;;  %v862_v33 = vpop.permute.xlu0 %861 }
 0x2bd   : > { %v756_v29 = vsel %vm751_vm3, %v750_v28, 0 }
 0x2be   : > { %1821 = vmatpush3.bf16.xpose.msra.mxu0 %v756_v29 }
 0x2bf   : > { %1826 = vmatprep.subr.bf16.mxu0 %v2126_v9 }
 0x2c0   : > { %v864_v30 = vpop.permute.xlu1 %863 }
 0x2c1   : > { %v869_v31 = vsel %vm751_vm3, %v864_v30, 0 }
 0x2c2   : > { %1833 = vmatpush3.bf16.xpose.msra.mxu1 %v869_v31 }
 0x2c3   : > { %1844 = vmatprep.subr.bf16.mxu1 %v2126_v9 }
 0x2c4   : > { %v981_v32 = vpop.permute.xlu1 %980 }
 0x2c5   : > { %1823 = vmatmul.mubr.msk.bf16.vlgmr.msra.gmra.mrb[4].mxu0 %vm751_vm3, %v2388_v26  ;;  %v986_v35 = vsel %vm751_vm3, %v981_v32, 0 }
 0x2c6   : > { %1828 = vmatprep.mubr.msk.bf16.mxu0 %vm2127_vm2, %v2126_v9 }
 0x2c8   : > { %v979_v34 = vpop.permute.xlu1 %978 }
 0x2c9   : > { %1835 = vmatmul.mubr.msk.bf16.vlgmr.msra.gmra.mrb[0].mxu1 %vm751_vm3, %v862_v33 }
 0x2ca   : > { %1845 = vmatpush3.bf16.xpose.msra.mxu1 %v986_v35  ;;  %1846 = vmatprep.mubr.msk.bf16.mxu1 %vm2127_vm2, %v2126_v9 }
 0x2cb   : > { %1856 = vmatprep.subr.bf16.mxu1 %v2126_v9 }
 0x2cc   : > { %v1098_v36 = vpop.permute.xlu1 %1097 }
 0x2cd   : > { %v1103_v37 = vsel %vm751_vm3, %v1098_v36, 0 }
 0x2d0   : > { %v1096_v38 = vpop.permute.xlu1 %1095 }
 0x2d1   : > { %1847 = vmatmul.mubr.msk.bf16.vlgmr.msra.gmra.mrb[4].mxu1 %vm751_vm3, %v979_v34 }
 0x2d2   : > { %1857 = vmatpush3.bf16.xpose.msra.mxu1 %v1103_v37  ;;  %1858 = vmatprep.mubr.msk.bf16.mxu1 %vm2127_vm2, %v2126_v9 }
 0x2d3   : > { %1868 = vmatprep.subr.bf16.mxu1 %v2126_v9 }
 0x2d9   : > { %1859 = vmatmul.mubr.msk.bf16.vlgmr.msra.gmra.mrb[8].mxu1 %vm751_vm3, %v1096_v38 }
 0x2da   : > { %1872 = vmatprep.mubr.msk.bf16.mxu1 %vm2127_vm2, %v2126_v9 }
 0x398   : > { %v792_v39 = vpop.f32.mrb[4].mxu0 }
 0x399   : > { %v798_v40 = vmul.f32 0.35355338, %v792_v39  ;;  %v1824_v41 = vpop.f32.mrb[5].mxu0 }
 0x39a   : > { %v795_v42 = vpop.f32.mrb[6].mxu0 }
 0x39b   : > { %v1825_v43 = vpop.f32.mrb[7].mxu0  ;;  %v799_v44 = vsel %vm751_vm3, %v798_v40, -inf }
 0x39c   : > { %v905_v45 = vpop.f32.mrb[0].mxu1  ;;  %800 = vmax.xlane.f32.xlu1 %v799_v44 }
 0x39d   : > { %v911_v46 = vmul.f32 0.35355338, %v905_v45  ;;  %v1836_v47 = vpop.f32.mrb[1].mxu1 }
 0x39e   : > { %v908_v48 = vpop.f32.mrb[2].mxu1 }
 0x39f   : > { %v1837_v49 = vpop.f32.mrb[3].mxu1  ;;  %v912_v50 = vsel %vm751_vm3, %v911_v46, -inf }
 0x3a0   : > { %913 = vmax.xlane.f32.xlu0 %v912_v50 }
 0x3a4   : > { %v1022_v51 = vpop.f32.mrb[4].mxu1 }
 0x3a5   : > { %v1028_v52 = vmul.f32 0.35355338, %v1022_v51  ;;  %v1848_v53 = vpop.f32.mrb[5].mxu1 }
 0x3a6   : > { %v1025_v54 = vpop.f32.mrb[6].mxu1  ;;  %v1994_v53 = vld [vmem:[%s2316_s23] sm:$0xff]  }
 0x3a7   : > { %v1849_v55 = vpop.f32.mrb[7].mxu1  ;;  %v1029_v56 = vsel %vm751_vm3, %v1028_v52, -inf  ;;  %1869 = vmatpush3.bf16.msra.mxu1 %v1994_v53  ;;  %v1995_v54 = vld [vmem:[%s2316_s23 + $0x8] sm:$0xff]   ;;  %s2637_s23 = sld [smem:[#allocation24_spill]] }
 0x3a8   : > { %1030 = vmax.xlane.f32.xlu1 %v1029_v56  ;;  %1870 = vmatprep.subr.bf16.mxu1 %v2126_v9 }
 0x3ab   : > { %1871 = vmatpush3.bf16.msra.mxu1 %v1995_v54 }
 0x3ac   : > { %v1139_v57 = vpop.f32.mrb[8].mxu1  ;;  %1884 = vmatprep.subr.bf16.mxu1 %v2126_v9 }
 0x3ad   : > { %v1145_v58 = vmul.f32 0.35355338, %v1139_v57  ;;  %v1860_v59 = vpop.f32.mrb[9].mxu1 }
 0x3ae   : > { %v1142_v60 = vpop.f32.mrb[10].mxu1 }
 0x3af   : > { %v1861_v61 = vpop.f32.mrb[11].mxu1  ;;  %v1146_v62 = vsel %vm751_vm3, %v1145_v58, -inf }
 0x3b0   : > { %1147 = vmax.xlane.f32.xlu0 %v1146_v62 }
 0x429   : > { %v801_v63 = vpop.xlane.xlu1 %800 }
 0x42a   : > { %v802_v0 = vsub.f32 %v798_v40, %v801_v63 }
 0x42c   : > { %v803_v2 = vmul.f32 1.442695, %v802_v0 }
 0x42d   : > { %v914_v3 = vpop.xlane.xlu0 %913 }
 0x42e   : > { %2008 = vpow2.f32 %v803_v2  ;;  %v915_v4 = vsub.f32 %v911_v46, %v914_v3 }
 0x430   : > { %v916_v5 = vmul.f32 1.442695, %v915_v4 }
 0x432   : > { %2010 = vpow2.f32 %v916_v5  ;;  %v1751_v5 = vld [vmem:[%s2631_s22] ss:$0 sm:$0xff] }
 0x435   : > { %v1031_v16 = vpop.xlane.xlu1 %1030 }
 0x436   : > { %v1032_v17 = vsub.f32 %v1028_v52, %v1031_v16 }
 0x438   : > { %v2009_v6 = vpop.eup %2008  ;;  %v1033_v18 = vmul.f32 1.442695, %v1032_v17 }
 0x439   : > { %v805_v7 = vsel %vm751_vm3, %v2009_v6, 0.0 }
 0x43a   : > { %806 = vadd.xlane.f32.xlu1 %v805_v7 }
 0x43c   : > { %v2011_v8 = vpop.eup %2010 }
 0x43d   : > { %v1148_v10 = vpop.xlane.xlu0 %1147  ;;  %v918_v11 = vsel %vm751_vm3, %v2011_v8, 0.0 }
 0x43e   : > { %v1149_v12 = vsub.f32 %v1145_v58, %v1148_v10  ;;  %919 = vadd.xlane.f32.xlu0 %v918_v11 }
 0x440   : > { %v1150_v13 = vmul.f32 1.442695, %v1149_v12 }
 0x442   : > { %2012 = vpow2.f32 %v1150_v13 }
 0x443   : > { %2014 = vpow2.f32 %v1033_v18 }
 0x44b   : > { %811 = vrot.lane.b32.xlu1 %v2388_v26, %s2135_s5 }
 0x44c   : > { %v2013_v14 = vpop.eup %2012 }
 0x44d   : > { %v1152_v15 = vsel %vm751_vm3, %v2013_v14, 0.0  ;;  %v2015_v19 = vpop.eup %2014 }
 0x44e   : > { %1153 = vadd.xlane.f32.xlu0 %v1152_v15  ;;  %v1035_v20 = vsel %vm751_vm3, %v2015_v19, 0.0 }
 0x464   : > { %924 = vrot.lane.b32.xlu0 %v2388_v26, %s2136_s13 }
 0x46f   : > { %1036 = vadd.xlane.f32.xlu1 %v1035_v20 }
 0x480   : > { %1041 = vrot.lane.b32.xlu1 %v2388_v26, %s2137_s27 }
 0x484   : > { %1158 = vrot.lane.b32.xlu1 %v2388_v26, %s2138_s29 }
 0x4c7   : > { %v807_v21 = vpop.xlane.xlu1 %806 }
 0x4c8   : > { %2016 = vrcp.f32 %v807_v21 }
 0x4cb   : > { %v812_v22 = vpop.permute.xlu1 %811  ;;  %v920_v24 = vpop.xlane.xlu0 %919 }
 0x4cc   : > { %v818_v23 = vsel %vm816_vm4, %v812_v22, 0  ;;  %2018 = vrcp.f32 %v920_v24  ;;  %v1755_v24 = vld [vmem:[%s2633_s21] ss:$0 sm:$0xff] }
 0x4cd   : > { %1827 = vmatpush3.bf16.msra.mxu0 %v818_v23 }
 0x4ce   : > { %1838 = vmatprep.subr.bf16.mxu0 %v2126_v9 }
 0x4d2   : > { %v2017_v25 = vpop.eup %2016 }
 0x4d3   : > { %v809_v27 = vmul.f32 %v2017_v25, %v2009_v6 }
 0x4d5   : > { %v810_v28 = vpack.c.bf16 %v809_v27, %v809_v27  ;;  %v1756_v27 = vld [vmem:[%s623_s0] ss:$0 sm:$0xff] }
 0x4d6   : > { %v2019_v26 = vpop.eup %2018 }
 0x4d7   : > { %1829 = vmatmul.mubr.msk.bf16.vlgmr.msra.gmra.mrb[8].mxu0 %vm751_vm3, %v810_v28  ;;  %v922_v30 = vmul.f32 %v2019_v26, %v2011_v8 }
 0x4d8   : > { %1840 = vmatprep.mubr.msk.bf16.mxu0 %vm2127_vm2, %v2126_v9 }
 0x4d9   : > { %v923_v33 = vpack.c.bf16 %v922_v30, %v922_v30  ;;  %v1998_v30 = vld [vmem:[%s2347_s7] sm:$0xff]  }
 0x4db   : > { %v1154_v29 = vpop.xlane.xlu0 %1153 }
 0x4df   : > { %v925_v31 = vpop.permute.xlu0 %924 }
 0x4e0   : > { %v930_v32 = vsel %vm816_vm4, %v925_v31, 0  ;;  %v1999_v31 = vld [vmem:[%s2347_s7 + $0x8] sm:$0xff]  }
 0x4e1   : > { %1839 = vmatpush3.bf16.msra.mxu0 %v930_v32  ;;  %v2000_v32 = vld [vmem:[%s2347_s7 + $0x10] sm:$0xff]  }
 0x4e2   : > { %1850 = vmatprep.subr.bf16.mxu0 %v2126_v9 }
 0x4e4   : > { %1841 = vmatmul.mubr.msk.bf16.vlgmr.msra.gmra.mrb[12].mxu0 %vm751_vm3, %v923_v33  ;;  %v2001_v33 = vld [vmem:[%s2347_s7 + $0x18] sm:$0xff]  }
 0x4e5   : > { %1852 = vmatprep.mubr.msk.bf16.mxu0 %vm2127_vm2, %v2126_v9 }
 0x4fc   : > { %v1037_v34 = vpop.xlane.xlu1 %1036 }
 0x4fd   : > { %2020 = vrcp.f32 %v1037_v34  ;;  %v2002_v34 = vld [vmem:[%s2347_s7 + $0x20] sm:$0xff]  }
 0x4fe   : > { %2022 = vrcp.f32 %v1154_v29 }
 0x500   : > { %v1042_v35 = vpop.permute.xlu1 %1041 }
 0x501   : > { %v1047_v36 = vsel %vm816_vm4, %v1042_v35, 0  ;;  %v2003_v35 = vld [vmem:[%s2347_s7 + $0x28] sm:$0xff]  }
 0x502   : > { %1851 = vmatpush3.bf16.msra.mxu0 %v1047_v36  ;;  %v2004_v36 = vld [vmem:[%s2347_s7 + $0x30] sm:$0xff]  }
 0x503   : > { %1862 = vmatprep.subr.bf16.mxu0 %v2126_v9 }
 0x504   : > { %v1159_v39 = vpop.permute.xlu1 %1158 }
 0x505   : > { %v1164_v42 = vsel %vm816_vm4, %v1159_v39, 0 }
 0x507   : > { %v2021_v37 = vpop.eup %2020 }
 0x508   : > { %v1039_v38 = vmul.f32 %v2021_v37, %v2015_v19  ;;  %v2023_v41 = vpop.eup %2022  ;;  %v1996_v19 = vld [vmem:[%s2333_s18] sm:$0xff]   ;;  %v2005_v37 = vld [vmem:[%s2347_s7 + $0x38] sm:$0xff]   ;;  %s2634_s7 = sld [smem:[#allocation10_spill]] }
 0x509   : > { %v1156_v43 = vmul.f32 %v2023_v41, %v2013_v14 }
 0x50a   : > { %v1040_v40 = vpack.c.bf16 %v1039_v38, %v1039_v38  ;;  %v1757_v38 = vld [vmem:[%s631_s11] ss:$0 sm:$0xff]  ;;  %s2635_s11 = sld [smem:[#allocation7_spill]] }
 0x50b   : > { %v1157_v44 = vpack.c.bf16 %v1156_v43, %v1156_v43 }
 0x50c   : > { %1853 = vmatmul.mubr.msk.bf16.vlgmr.msra.gmra.mrb[16].mxu0 %vm751_vm3, %v1040_v40 }
 0x50d   : > { %1863 = vmatpush3.bf16.msra.mxu0 %v1164_v42  ;;  %1864 = vmatprep.mubr.msk.bf16.mxu0 %vm2127_vm2, %v2126_v9 }
 0x50e   : > { %1876 = vmatprep.subr.bf16.mxu0 %v2126_v9  ;;  %s1771_s29 = sshll.u32 %s2634_s7, 7 }
 0x50f   : > { %s2515_s19 = scalar_lea.hbm %s2637_s23, %s1771_s29 }
 0x510   : > { %s2638_s30 = sand.u32 1, %s2635_s11  }
 0x514   : > { %1865 = vmatmul.mubr.msk.bf16.vlgmr.msra.gmra.mrb[20].mxu0 %vm751_vm3, %v1157_v44 }
 0x515   : > { %1880 = vmatprep.mubr.msk.bf16.mxu0 %vm2127_vm2, %v2126_v9  ;;  %1877 = vmatpush3.bf16.msra.mxu0 %v1996_v19 }
 0x516   : > { %1878 = vmatprep.subr.bf16.mxu0 %v2126_v9 }
 0x5aa   : > { %v854_v45 = vpop.f32.mrb[8].mxu0 }
 0x5ab   : > { %860 = vst.msk [vmem:[#allocation2] sm:$0xff] %vm751_vm3, %v854_v45  ;;  %v1830_v46 = vpop.f32.mrb[9].mxu0 }
 0x5ac   : > { %v857_v47 = vpop.f32.mrb[10].mxu0 }
 0x5ad   : > { %v1831_v48 = vpop.f32.mrb[11].mxu0 }
 0x5b7   : > { %v966_v49 = vpop.f32.mrb[12].mxu0 }
 0x5b8   : > { %973 = vrot.lane.b32.xlu0 %v966_v49, %s2139_s14  ;;  %v1842_v50 = vpop.f32.mrb[13].mxu0  ;;  %s1531_s14 = sshll.u32 %s2349_s26, 4  ;;  %s2517_s14 = int_to_ptr.vmem [resolvable:$true] %s1531_s14 }
 0x5b9   : > { %v969_v51 = vpop.f32.mrb[14].mxu0  ;;  %s2030_s22 = scalar_lea.vmem %s2517_s14, 128  ;;  %p2037_p5 = scmp.lt.s32.totalorder %s2517_s14, %s2035_s16 }
 0x5ba   : > { %v1843_v52 = vpop.f32.mrb[15].mxu0  ;;  %p2031_p1 = scmp.ne.s32.totalorder %s2517_s14, %s2030_s22  ;;  %p2038_p6 = scmp.lt.s32.totalorder %s2036_s15, %s2030_s22 }
 0x5bc   : > { %p2032_p2 = pnand %p2031_p1, %p2263_p3  ;;  %p2039_p7 = por %p2038_p6, %p2037_p5 }
 0x5be   : > { %p2033_p4 = pneg %p2032_p2 }
 0x5c0   : > { %p2040_p8 = pnand %p2039_p7, %p2033_p4 }
 0x5df   : > { %v1083_v55 = vpop.f32.mrb[16].mxu0 }
 0x5e0   : > { %1090 = vrot.lane.b32.xlu1 %v1083_v55, %s2140_s17  ;;  %v1854_v56 = vpop.f32.mrb[17].mxu0 }
 0x5e1   : > { %v1086_v57 = vpop.f32.mrb[18].mxu0 }
 0x5e2   : > { %v1855_v58 = vpop.f32.mrb[19].mxu0 }
 0x5e7   : > { %v1200_v59 = vpop.f32.mrb[20].mxu0 }
 0x5e8   : > { %1207 = vrot.lane.b32.xlu0 %v1200_v59, %s2141_s28  ;;  %v1866_v60 = vpop.f32.mrb[21].mxu0 }
 0x5e9   : > { %v1203_v61 = vpop.f32.mrb[22].mxu0 }
 0x5ea   : > { %v1867_v62 = vpop.f32.mrb[23].mxu0 }
 0x62a   : > { %v974_v63 = vpop.permute.xlu0 %973 }
 0x62b   : > { %977 = vst.msk [vmem:[#allocation2] sm:$0xff] %vm976_vm5, %v974_v63  ;;  %v2142_v63 = vmov -1.0  }
 0x652   : > { %v1091_v0 = vpop.permute.xlu1 %1090 }
 0x653   : > { %1094 = vst.msk [vmem:[#allocation2] sm:$0xff] %vm1093_vm6, %v1091_v0 }
 0x65a   : > { %v1208_v2 = vpop.permute.xlu0 %1207 }
 0x65b   : > { %1211 = vst.msk [vmem:[#allocation2] sm:$0xff] %vm1210_vm7, %v1208_v2 }
 0x662   : > { %v1212_v3 = vld [vmem:[#allocation2] sm:$0xff] }
 0x663   : > { %v1213_v4 = vpack.c.bf16 %v1212_v3, %v1212_v3 }
 0x665   : > { %1873 = vmatmul.mubr.msk.bf16.vlgmr.msra.gmra.mrb[12].mxu1 %vm651_vm1, %v1213_v4 }
 0x666   : > { %1900 = vmatprep.mubr.msk.bf16.mxu1 %vm2127_vm2, %v2126_v9  ;;  %1885 = vmatpush3.bf16.msra.mxu1 %v1998_v30 }
 0x667   : > { %1886 = vmatprep.subr.bf16.mxu1 %v2126_v9 }
 0x66a   : > { %1887 = vmatpush3.bf16.msra.mxu1 %v1999_v31 }
 0x66b   : > { %1888 = vmatprep.subr.bf16.mxu1 %v2126_v9 }
 0x66e   : > { %1889 = vmatpush3.bf16.msra.mxu1 %v2000_v32 }
 0x66f   : > { %1890 = vmatprep.subr.bf16.mxu1 %v2126_v9 }
 0x672   : > { %1891 = vmatpush3.bf16.msra.mxu1 %v2001_v33 }
 0x673   : > { %1892 = vmatprep.subr.bf16.mxu1 %v2126_v9 }
 0x676   : > { %1893 = vmatpush3.bf16.msra.mxu1 %v2002_v34 }
 0x677   : > { %1894 = vmatprep.subr.bf16.mxu1 %v2126_v9 }
 0x67a   : > { %1895 = vmatpush3.bf16.msra.mxu1 %v2003_v35 }
 0x67b   : > { %1896 = vmatprep.subr.bf16.mxu1 %v2126_v9 }
 0x67e   : > { %1897 = vmatpush3.bf16.msra.mxu1 %v2004_v36 }
 0x67f   : > { %1898 = vmatprep.subr.bf16.mxu1 %v2126_v9 }
 0x682   : > { %1899 = vmatpush3.bf16.msra.mxu1 %v2005_v37 }
 0x738   : > { %v1274_v6 = vpop.f32.mrb[12].mxu1 }
 0x739   : > { %v1275_v7 = vadd.f32 %v1751_v5, %v1274_v6  ;;  %v1874_v8 = vpop.f32.mrb[13].mxu1 }
 0x73a   : > { %v1277_v10 = vpop.f32.mrb[14].mxu1 }
 0x73b   : > { %v2464_v11 = vadd.f32 %v1275_v7, %v2354_v1  ;;  %v1875_v12 = vpop.f32.mrb[15].mxu1  ;;  %v1997_v1 = vld [vmem:[%s2333_s18 + $0x8] sm:$0xff]   ;;  %v1761_v7 = vld [vmem:[%s639_s25] ss:$0 sm:$0xff]  ;;  %s1518_s25 = scalar_lea.sflag [#allocation4], %s2638_s30 }
 0x73c   : > { %1879 = vmatpush3.bf16.msra.mxu0 %v1997_v1 }
 0x73d   : > { %v1283_v13 = vsel %vm651_vm1, %v2464_v11, 0.0 }
 0x73e   : > { %1284 = vadd.xlane.f32.xlu1 %v1283_v13 }
 0x7cb   : > { %v1285_v14 = vpop.xlane.xlu1 %1284 }
 0x7cc   : > { %v1286_v15 = vmul.f32 0.03125, %v1285_v14 }
 0x7ce   : > { %v1287_v16 = vsub.f32 %v2464_v11, %v1286_v15 }
 0x7d0   : > { %v1288_v17 = vmul.f32 %v1287_v16, %v1287_v16 }
 0x7d2   : > { %v1289_v18 = vsel %vm651_vm1, %v1288_v17, 0.0 }
 0x7d3   : > { %1290 = vadd.xlane.f32.xlu0 %v1289_v18 }
 0x860   : > { %v1291_v20 = vpop.xlane.xlu0 %1290 }
 0x861   : > { %v1292_v21 = vmul.f32 0.03125, %v1291_v20 }
 0x863   : > { %v1293_v22 = vadd.f32 1e-12, %v1292_v21 }
 0x865   : > { %2024 = vrsqrt.f32 %v1293_v22 }
 0x86f   : > { %v2025_v23 = vpop.eup %2024 }
 0x870   : > { %v1295_v25 = vmul.f32 %v2025_v23, %v1287_v16 }
 0x872   : > { %v1302_v28 = vmul.f32 %v1755_v24, %v1295_v25 }
 0x874   : > { %v1309_v26 = vadd.f32 %v1756_v27, %v1302_v28 }
 0x876   : > { %v1310_v29 = vpack.c.bf16 %v1309_v26, %v1309_v26 }
 0x878   : > { %1881 = vmatmul.mubr.msk.bf16.vlgmr.msra.gmra.mrb[24].mxu0 %vm651_vm1, %v1310_v29 }
 0x94b   : > { %v1371_v39 = vpop.f32.mrb[24].mxu0 }
 0x94c   : > { %v1372_v40 = vadd.f32 %v1757_v38, %v1371_v39  ;;  %v1882_v41 = vpop.f32.mrb[25].mxu0 }
 0x94d   : > { %v1374_v42 = vpop.f32.mrb[26].mxu0 }
 0x94e   : > { %v1378_v43 = vmul.f32 0.70710677, %v1372_v40  ;;  %v1883_v44 = vpop.f32.mrb[27].mxu0  ;;  %v1377_v3 = vmul.f32 0.5, %v1372_v40 }
 0x950   : > { %v1381_v45 = vand.u32 2147483647, %v1378_v43  ;;  %vm1379_vm8 = vcmp.ge.f32.partialorder %v1378_v43, 0.0 }
 0x951   : > { %v1380_v0 = vsel %vm1379_vm8, 1.0, %v2142_v63 }
 0x952   : > { %v1382_v46 = vmul.f32 0.3275911, %v1381_v45  ;;  %v1394_v48 = vsub.f32 0.0, %v1381_v45 }
 0x954   : > { %v1383_v47 = vadd.f32 1.0, %v1382_v46  ;;  %v1395_v9 = vmul.f32 %v1394_v48, %v1381_v45 }
 0x956   : > { %2026 = vrcp.f32 %v1383_v47  ;;  %v1396_v52 = vmul.f32 1.442695, %v1395_v9 }
 0x958   : > { %2028 = vpow2.f32 %v1396_v52 }
 0x960   : > { %v2027_v49 = vpop.eup %2026 }
 0x961   : > { %v1385_v50 = vmul.f32 1.0614054, %v2027_v49 }
 0x962   : > { %v2029_v60 = vpop.eup %2028 }
 0x963   : > { %v1386_v51 = vadd.f32 -1.4531521, %v1385_v50 }
 0x965   : > { %v1387_v53 = vmul.f32 %v2027_v49, %v1386_v51 }
 0x967   : > { %v1388_v54 = vadd.f32 1.4214138, %v1387_v53 }
 0x969   : > { %v1389_v55 = vmul.f32 %v2027_v49, %v1388_v54 }
 0x96b   : > { %v1390_v56 = vadd.f32 -0.28449672, %v1389_v55 }
 0x96d   : > { %v1391_v57 = vmul.f32 %v2027_v49, %v1390_v56 }
 0x96f   : > { %v1392_v58 = vadd.f32 0.2548296, %v1391_v57 }
 0x971   : > { %v1393_v59 = vmul.f32 %v2027_v49, %v1392_v58 }
 0x973   : > { %v1398_v61 = vmul.f32 %v2029_v60, %v1393_v59 }
 0x975   : > { %v1399_v62 = vsub.f32 1.0, %v1398_v61 }
 0x977   : > { %v1400_v2 = vmul.f32 %v1399_v62, %v1380_v0 }
 0x979   : > { %v1401_v4 = vadd.f32 1.0, %v1400_v2 }
 0x97b   : > { %v1402_v5 = vmul.f32 %v1401_v4, %v1377_v3 }
 0x97d   : > { %v1403_v6 = vpack.c.bf16 %v1402_v5, %v1402_v5 }
 0x97f   : > { %1901 = vmatmul.mubr.bf16.vlgmr.msra.gmra.mrb[16].mxu1 %v1403_v6 }
 0xa52   : > { %v1509_v8 = vpop.f32.mrb[16].mxu1 }
 0xa53   : > { %v1510_v10 = vadd.f32 %v1761_v7, %v1509_v8  ;;  %v1902_v12 = vpop.f32.mrb[17].mxu1 }
 0xa54   : > { %v1512_v13 = vpop.f32.mrb[18].mxu1 }
 0xa55   : > { %v1515_v14 = vadd.f32 %v1510_v10, %v2464_v11  ;;  %v1903_v15 = vpop.f32.mrb[19].mxu1 }
 0xa57   : > { %1516 = vst.msk [vmem:[%s2349_s26] sm:$0xff] %vm651_vm1, %v1515_v14 }
 0xa58   : > { %2043 = shalt.err (!%p2040_p8)
}
 0xa59   : > { %s2044_s26 = scalar_lea.hbm %s2515_s19, 128  ;;  %s2048_s3 = scalar_lea.hbm %s2637_s23, 256 }
 0xa5a   : > { %p2045_p10 = scmp.ne.s32.totalorder %s2515_s19, %s2044_s26  ;;  %p2049_p13 = scmp.lt.u32.totalorder %s2515_s19, %s2637_s23 }
 0xa5b   : > { %p2050_p0 = scmp.lt.u32.totalorder %s2048_s3, %s2044_s26  ;;  %p2052_p2 = scmp.lt.u32.totalorder %s2044_s26, %s2515_s19 }
 0xa5c   : > { %p2046_p11 = pnand %p2045_p10, %p2263_p3 }
 0xa5d   : > { %p2051_p1 = por %p2050_p0, %p2049_p13 }
 0xa5e   : > { %p2047_p12 = pneg %p2046_p11 }
 0xa5f   : > { %p2053_p4 = por %p2052_p2, %p2051_p1 }
 0xa61   : > { %p2054_p5 = pnand %p2053_p4, %p2047_p12 }
 0xa63   : > { %2057 = shalt.err (!%p2054_p5)
}
 0xa64   : > { %1904 = dma.vmem_to_hbm [thread:$0]  (%p2263_p3), %s2517_s14, 128, %s2515_s19, %s1518_s25  }
 0xa65 PF: > { %s2639_s7 = sld [smem:[#allocation13_spill]]  ;;  %s2640_s11 = sld [smem:[#allocation6_spill]] }
 0xa6b   : > { %p1910_p6 = scmp.ge.s32.totalorder %s2639_s7, 2  ;;  %s1543_s13 = sand.u32 1, %s2640_s11  }
 0xa6c   : > { %s1544_s29 = scalar_lea.sflag [#allocation4], %s1543_s13 }
 0xa6d   : > { %p1907_p7 = pnand %p1910_p6, %p2273_p9 }
 0xa6f   : > { %2091 = dma.done.wait (!%p1907_p7), %s1544_s29, 128  }
 0xa70   : > { %2093 = vsyncadd (!%p1907_p7), %s1544_s29, 4294967168  ;;  %s26_s15 = sadd.s32 1, %s2639_s7   ;;  %s2642_s25 = sld [smem:[#allocation7_spill]] }
 0xa71   : > { %p23_p8 = scmp.ge.s32.totalorder %s26_s15, 6   ;;  %s2643_s26 = sld [smem:[#allocation8_spill]] }
 0xa72   : > { %s2644_s27 = sld [smem:[#allocation18_spill]]  ;;  %s2645_s28 = sld [smem:[#allocation11_spill]] }
 0xa73   : > { %s2646_s29 = sld [smem:[#allocation12_spill]]  ;;  %s2647_s30 = sld [smem:[#allocation14_spill]] }
 0xa74   : > { %s2648_s14 = sld [smem:[#allocation16_spill]]  ;;  %25 = sbr.rel (!%p23_p8) target bundleno = 12 (0xc), region = 147 }
 0xa7b   :  { %1549 = vsyncpa [#allocation4], 1 }
 0xa7c   :  { %1551 = vsyncpa [#allocation4 + $0x1], 1 }

</bundles_post_ra>
